<compile_context>
chip_gen: v7x
topology: tpu7x:2x2x1
jax: 0.10.0
libtpu: 0.0.40
codegen_flags: <defaults>
</compile_context>

<pallas_src>
import functools
import math

import jax
import jax.numpy as jnp
from jax import lax
from jax.experimental import pallas as pl
from jax.experimental.pallas import tpu as pltpu

_BN_EPS = 1e-5


def _basic_block_kernel(x_ref, hh_ref, ww_ref, w0_ref, b0_ref, w1_ref, b1_ref,
                        out_ref, pad_ref, patch_ref, *, h, w):
    """Fully fused BasicBlock forward on a channels-major (C, N*H*W) slab.

    x_ref:        (C, NHW)        f32  channels-major input (also the residual)
    hh_ref/ww_ref:(C, NHW)        i32  spatial row/col index of each column
    w0_ref/w1_ref:(C, 9C)         f32  conv weights, row = (kh*3+kw)*C + ci
    b0_ref/b1_ref:(C, 1)          f32  conv biases (added AFTER BN — module quirk)
    out_ref:      (C, NHW)        f32
    pad_ref:      (C, NHW+2W+2)   f32  scratch: flat zero-padded activation
    patch_ref:    (9C, NHW)       f32  scratch: im2col patch matrix
    """
    c, nhw = x_ref.shape
    halo = w + 1                       # max |flat shift| of a 3x3 'same' tap
    hh = hh_ref[...]
    ww = ww_ref[...]

    pad_ref[...] = jnp.zeros_like(pad_ref)   # zero the halo region once

    def build_patches(act):
        """(C, NHW) activation -> (9C, NHW) patch matrix in patch_ref.

        Tap (kh, kw) of a 3x3 'same' conv is the activation shifted by
        (kh-1)*W + (kw-1) in the flat NHW axis, with rows/cols that fall off
        the image masked to zero (masking also covers the roll-over columns
        that would otherwise leak between rows / images).
        """
        pad_ref[:, halo:halo + nhw] = act
        for kh in range(3):
            for kw in range(3):
                dh, dw = kh - 1, kw - 1
                start = halo + dh * w + dw
                tap = pad_ref[:, start:start + nhw]
                valid = None
                if dh < 0:
                    valid = hh >= -dh
                elif dh > 0:
                    valid = hh < h - dh
                if dw < 0:
                    vw = ww >= -dw
                    valid = vw if valid is None else (valid & vw)
                elif dw > 0:
                    vw = ww < w - dw
                    valid = vw if valid is None else (valid & vw)
                if valid is not None:
                    tap = jnp.where(valid, tap, 0.0)
                t = kh * 3 + kw
                patch_ref[t * c:(t + 1) * c, :] = tap

    def conv_bn_bias(w_ref, b_ref):
        # One lane-dense MXU matmul: (C, 9C) @ (9C, NHW), bf16 in / f32 acc.
        acc = jnp.dot(w_ref[...].astype(jnp.bfloat16),
                      patch_ref[...].astype(jnp.bfloat16),
                      preferred_element_type=jnp.float32)
        # BatchNorm2d(affine=False), training-mode biased batch stats over the
        # lane (N*H*W) axis; centered tensor reused for var and normalize.
        mean = jnp.mean(acc, axis=1, keepdims=True)
        centered = acc - mean
        var = jnp.mean(centered * centered, axis=1, keepdims=True)
        return centered * lax.rsqrt(var + _BN_EPS) + b_ref[...]

    x = x_ref[...]

    # conv0 + BN + bias + ReLU
    build_patches(x)
    y0 = jnp.maximum(conv_bn_bias(w0_ref, b0_ref), 0.0)

    # conv1 + BN + bias (y0 never leaves the chip), residual add, final ReLU
    build_patches(y0)
    y1 = conv_bn_bias(w1_ref, b1_ref)
    out_ref[...] = jnp.maximum(y1 + x, 0.0)


def basic_block(x_nchw, w0, b0, w1, b1):
    """BasicBlock forward.  x: (N, C, H, W); w*: (C, C, 3, 3); b*: (C,)."""
    n, c, h, w = x_nchw.shape
    nhw = n * h * w
    x32 = x_nchw.astype(jnp.float32)

    # Channels-major slab: conv0 input AND the residual (one transpose in).
    x_cm = jnp.transpose(x32, (1, 0, 2, 3)).reshape(c, nhw)

    # Spatial index vectors for the in-kernel boundary masks.  These depend
    # only on static shapes, so XLA folds them to constants under jit.
    col = jnp.arange(nhw, dtype=jnp.int32)
    hh = jnp.broadcast_to((col // w) % h, (c, nhw))
    ww = jnp.broadcast_to(col % w, (c, nhw))

    # (Cout, Cin, kh, kw) -> (Cout, kh, kw, Cin) -> (Cout, 9*Cin)
    w0r = jnp.transpose(w0, (0, 2, 3, 1)).reshape(c, 9 * c).astype(jnp.float32)
    w1r = jnp.transpose(w1, (0, 2, 3, 1)).reshape(c, 9 * c).astype(jnp.float32)
    b0c = b0.reshape(c, 1).astype(jnp.float32)
    b1c = b1.reshape(c, 1).astype(jnp.float32)

    kernel = functools.partial(_basic_block_kernel, h=h, w=w)

    flops = 2 * (2 * c * 9 * c * nhw) + 30 * c * nhw
    bytes_accessed = 4 * (4 * c * nhw + 2 * 9 * c * c + 2 * c)  # in+out+idx+weights
    cost = pl.CostEstimate(flops=int(flops), transcendentals=int(2 * c),
                           bytes_accessed=int(bytes_accessed))

    vmem = pl.BlockSpec(memory_space=pltpu.MemorySpace.VMEM)
    out_cm = pl.pallas_call(
        kernel,
        out_shape=jax.ShapeDtypeStruct((c, nhw), jnp.float32),
        in_specs=[vmem] * 7,
        out_specs=vmem,
        scratch_shapes=[pltpu.VMEM((c, nhw + 2 * w + 2), jnp.float32),
                        pltpu.VMEM((9 * c, nhw), jnp.float32)],
        compiler_params=pltpu.CompilerParams(vmem_limit_bytes=16 * 1024 * 1024),
        cost_estimate=cost,
    )(x_cm, hh, ww, w0r, b0c, w1r, b1c)

    # Single layout op back to NCHW at the block boundary.
    return jnp.transpose(out_cm.reshape(c, n, h, w), (1, 0, 2, 3))


def _reference(x, w0, b0, w1, b1, *, bf16_matmul):
    """Pure-JAX reference with the PyTorch forward structure.

    bf16_matmul=True mirrors the kernel's matmul precision (bf16 operands,
    f32 accumulation on both convs); False is the full-f32 reference.
    """
    def conv_bn(inp, wgt, b, relu):
        if bf16_matmul:
            y = lax.conv_general_dilated(
                inp.astype(jnp.bfloat16), wgt.astype(jnp.bfloat16),
                window_strides=(1, 1), padding=((1, 1), (1, 1)),
                dimension_numbers=('NCHW', 'OIHW', 'NCHW'),
                preferred_element_type=jnp.float32)
        else:
            y = lax.conv_general_dilated(
                inp, wgt, window_strides=(1, 1), padding=((1, 1), (1, 1)),
                dimension_numbers=('NCHW', 'OIHW', 'NCHW'),
                precision=lax.Precision.HIGHEST)
        mean = jnp.mean(y, axis=(0, 2, 3), keepdims=True)
        var = jnp.mean(jnp.square(y - mean), axis=(0, 2, 3), keepdims=True)
        y = (y - mean) * lax.rsqrt(var + _BN_EPS) + b.reshape(1, -1, 1, 1)
        return jnp.maximum(y, 0.0) if relu else y

    y = conv_bn(x, w0, b0, True)     # conv0 (nonlinear='relu')
    y = conv_bn(y, w1, b1, False)    # conv1 (nonlinear=False)
    return jnp.maximum(x + y, 0.0)   # residual + BasicBlock ReLU


if __name__ == "__main__":
    key = jax.random.PRNGKey(0)
    n, c, h, w = 2, 4, 16, 16
    k_x, k_w0, k_b0, k_w1, k_b1 = jax.random.split(key, 5)

    x = jax.random.normal(k_x, (n, c, h, w), dtype=jnp.float32)
    # Conv.reset_parameters: U(-stdv, stdv), stdv = 1/sqrt(Cin*Kh*Kw)
    stdv = 1.0 / math.sqrt(c * 3 * 3)
    w0 = jax.random.uniform(k_w0, (c, c, 3, 3), jnp.float32, -stdv, stdv)
    b0 = jax.random.uniform(k_b0, (c,), jnp.float32, -stdv, stdv)
    w1 = jax.random.uniform(k_w1, (c, c, 3, 3), jnp.float32, -stdv, stdv)
    b1 = jax.random.uniform(k_b1, (c,), jnp.float32, -stdv, stdv)

    out = jax.block_until_ready(jax.jit(basic_block)(x, w0, b0, w1, b1))
    assert out.shape == (n, c, h, w)

    # Tight check against a reference that mirrors the kernel's matmul precision.
    ref_matched = _reference(x, w0, b0, w1, b1, bf16_matmul=True)
    diff_m = float(jnp.max(jnp.abs(out - ref_matched)))
    assert jnp.allclose(out, ref_matched, rtol=1e-3, atol=1e-3), (
        f"mismatch vs precision-matched reference: max abs diff = {diff_m}")

    # Loose sanity check against the full-f32 reference (bounds the bf16 drop).
    ref_f32 = _reference(x, w0, b0, w1, b1, bf16_matmul=False)
    diff_f = float(jnp.max(jnp.abs(out - ref_f32)))
    assert jnp.allclose(out, ref_f32, rtol=1e-1, atol=1e-1), (
        f"mismatch vs f32 reference: max abs diff = {diff_f}")

    print("KERNEL_OK")
</pallas_src>

<mosaic_0001>
module attributes {stable_mosaic.version = 11 : i64} {
  func.func @_basic_block_kernel(%arg0: memref<4x512xf32, #tpu.memory_space<vmem>>, %arg1: memref<4x512xi32, #tpu.memory_space<vmem>>, %arg2: memref<4x512xi32, #tpu.memory_space<vmem>>, %arg3: memref<4x36xf32, #tpu.memory_space<vmem>>, %arg4: memref<4x1xf32, #tpu.memory_space<vmem>>, %arg5: memref<4x36xf32, #tpu.memory_space<vmem>>, %arg6: memref<4x1xf32, #tpu.memory_space<vmem>>, %arg7: memref<4x512xf32, #tpu.memory_space<vmem>>, %arg8: memref<4x546xf32, #tpu.memory_space<vmem>>, %arg9: memref<36x512xf32, #tpu.memory_space<vmem>>) attributes {dimension_semantics = [], scalar_prefetch = 0 : i64, scratch_operands = 2 : i64, tpu.core_type = #tpu.core_type<tc>} {
    %c0 = arith.constant 0 : index
    %c0_0 = arith.constant 0 : index
    %0 = vector.load %arg1[%c0, %c0_0] : memref<4x512xi32, #tpu.memory_space<vmem>>, vector<4x512xi32>
    %c0_1 = arith.constant 0 : index
    %c0_2 = arith.constant 0 : index
    %1 = vector.load %arg2[%c0_1, %c0_2] : memref<4x512xi32, #tpu.memory_space<vmem>>, vector<4x512xi32>
    %cst = arith.constant 0.000000e+00 : f32
    %2 = vector.broadcast %cst : f32 to vector<4x546xf32>
    %c0_3 = arith.constant 0 : index
    %c0_4 = arith.constant 0 : index
    %3 = vector.load %arg8[%c0_3, %c0_4] : memref<4x546xf32, #tpu.memory_space<vmem>>, vector<4x546xf32>
    tpu.vector_store %arg8[%c0_3, %c0_4], %2 {strides = array<i32>} : memref<4x546xf32, #tpu.memory_space<vmem>>, vector<4x546xf32>,
    %c0_5 = arith.constant 0 : index
    %c0_6 = arith.constant 0 : index
    %4 = vector.load %arg0[%c0_5, %c0_6] : memref<4x512xf32, #tpu.memory_space<vmem>>, vector<4x512xf32>
    %c0_7 = arith.constant 0 : index
    %c17 = arith.constant 17 : index
    %5 = vector.load %arg8[%c0_7, %c17] : memref<4x546xf32, #tpu.memory_space<vmem>>, vector<4x512xf32>
    tpu.vector_store %arg8[%c0_7, %c17], %4 {strides = array<i32>} : memref<4x546xf32, #tpu.memory_space<vmem>>, vector<4x512xf32>,
    %c0_8 = arith.constant 0 : index
    %c0_9 = arith.constant 0 : index
    %6 = vector.load %arg8[%c0_8, %c0_9] : memref<4x546xf32, #tpu.memory_space<vmem>>, vector<4x512xf32>
    %c1_i32 = arith.constant 1 : i32
    %7 = vector.broadcast %c1_i32 : i32 to vector<4x512xi32>
    %8 = arith.cmpi sge, %0, %7 : vector<4x512xi32>
    %c1_i32_10 = arith.constant 1 : i32
    %9 = vector.broadcast %c1_i32_10 : i32 to vector<4x512xi32>
    %10 = arith.cmpi sge, %1, %9 : vector<4x512xi32>
    %11 = arith.andi %8, %10 : vector<4x512xi1>
    %cst_11 = arith.constant 0.000000e+00 : f32
    %12 = vector.broadcast %cst_11 : f32 to vector<4x512xf32>
    %13 = arith.select %11, %6, %12 : vector<4x512xi1>, vector<4x512xf32>
    %c0_12 = arith.constant 0 : index
    %c0_13 = arith.constant 0 : index
    %14 = vector.load %arg9[%c0_12, %c0_13] : memref<36x512xf32, #tpu.memory_space<vmem>>, vector<4x512xf32>
    tpu.vector_store %arg9[%c0_12, %c0_13], %13 {strides = array<i32>} : memref<36x512xf32, #tpu.memory_space<vmem>>, vector<4x512xf32>,
    %c0_14 = arith.constant 0 : index
    %c1 = arith.constant 1 : index
    %15 = vector.load %arg8[%c0_14, %c1] : memref<4x546xf32, #tpu.memory_space<vmem>>, vector<4x512xf32>
    %c1_i32_15 = arith.constant 1 : i32
    %16 = vector.broadcast %c1_i32_15 : i32 to vector<4x512xi32>
    %17 = arith.cmpi sge, %0, %16 : vector<4x512xi32>
    %cst_16 = arith.constant 0.000000e+00 : f32
    %18 = vector.broadcast %cst_16 : f32 to vector<4x512xf32>
    %19 = arith.select %17, %15, %18 : vector<4x512xi1>, vector<4x512xf32>
    %c4 = arith.constant 4 : index
    %c0_17 = arith.constant 0 : index
    %20 = vector.load %arg9[%c4, %c0_17] : memref<36x512xf32, #tpu.memory_space<vmem>>, vector<4x512xf32>
    tpu.vector_store %arg9[%c4, %c0_17], %19 {strides = array<i32>} : memref<36x512xf32, #tpu.memory_space<vmem>>, vector<4x512xf32>,
    %c0_18 = arith.constant 0 : index
    %c2 = arith.constant 2 : index
    %21 = vector.load %arg8[%c0_18, %c2] : memref<4x546xf32, #tpu.memory_space<vmem>>, vector<4x512xf32>
    %c1_i32_19 = arith.constant 1 : i32
    %22 = vector.broadcast %c1_i32_19 : i32 to vector<4x512xi32>
    %23 = arith.cmpi sge, %0, %22 : vector<4x512xi32>
    %c15_i32 = arith.constant 15 : i32
    %24 = vector.broadcast %c15_i32 : i32 to vector<4x512xi32>
    %25 = arith.cmpi slt, %1, %24 : vector<4x512xi32>
    %26 = arith.andi %23, %25 : vector<4x512xi1>
    %cst_20 = arith.constant 0.000000e+00 : f32
    %27 = vector.broadcast %cst_20 : f32 to vector<4x512xf32>
    %28 = arith.select %26, %21, %27 : vector<4x512xi1>, vector<4x512xf32>
    %c8 = arith.constant 8 : index
    %c0_21 = arith.constant 0 : index
    %29 = vector.load %arg9[%c8, %c0_21] : memref<36x512xf32, #tpu.memory_space<vmem>>, vector<4x512xf32>
    tpu.vector_store %arg9[%c8, %c0_21], %28 {strides = array<i32>} : memref<36x512xf32, #tpu.memory_space<vmem>>, vector<4x512xf32>,
    %c0_22 = arith.constant 0 : index
    %c16 = arith.constant 16 : index
    %30 = vector.load %arg8[%c0_22, %c16] : memref<4x546xf32, #tpu.memory_space<vmem>>, vector<4x512xf32>
    %c1_i32_23 = arith.constant 1 : i32
    %31 = vector.broadcast %c1_i32_23 : i32 to vector<4x512xi32>
    %32 = arith.cmpi sge, %1, %31 : vector<4x512xi32>
    %cst_24 = arith.constant 0.000000e+00 : f32
    %33 = vector.broadcast %cst_24 : f32 to vector<4x512xf32>
    %34 = arith.select %32, %30, %33 : vector<4x512xi1>, vector<4x512xf32>
    %c12 = arith.constant 12 : index
    %c0_25 = arith.constant 0 : index
    %35 = vector.load %arg9[%c12, %c0_25] : memref<36x512xf32, #tpu.memory_space<vmem>>, vector<4x512xf32>
    tpu.vector_store %arg9[%c12, %c0_25], %34 {strides = array<i32>} : memref<36x512xf32, #tpu.memory_space<vmem>>, vector<4x512xf32>,
    %c0_26 = arith.constant 0 : index
    %c17_27 = arith.constant 17 : index
    %36 = vector.load %arg8[%c0_26, %c17_27] : memref<4x546xf32, #tpu.memory_space<vmem>>, vector<4x512xf32>
    %c16_28 = arith.constant 16 : index
    %c0_29 = arith.constant 0 : index
    %37 = vector.load %arg9[%c16_28, %c0_29] : memref<36x512xf32, #tpu.memory_space<vmem>>, vector<4x512xf32>
    tpu.vector_store %arg9[%c16_28, %c0_29], %36 {strides = array<i32>} : memref<36x512xf32, #tpu.memory_space<vmem>>, vector<4x512xf32>,
    %c0_30 = arith.constant 0 : index
    %c18 = arith.constant 18 : index
    %38 = vector.load %arg8[%c0_30, %c18] : memref<4x546xf32, #tpu.memory_space<vmem>>, vector<4x512xf32>
    %c15_i32_31 = arith.constant 15 : i32
    %39 = vector.broadcast %c15_i32_31 : i32 to vector<4x512xi32>
    %40 = arith.cmpi slt, %1, %39 : vector<4x512xi32>
    %cst_32 = arith.constant 0.000000e+00 : f32
    %41 = vector.broadcast %cst_32 : f32 to vector<4x512xf32>
    %42 = arith.select %40, %38, %41 : vector<4x512xi1>, vector<4x512xf32>
    %c20 = arith.constant 20 : index
    %c0_33 = arith.constant 0 : index
    %43 = vector.load %arg9[%c20, %c0_33] : memref<36x512xf32, #tpu.memory_space<vmem>>, vector<4x512xf32>
    tpu.vector_store %arg9[%c20, %c0_33], %42 {strides = array<i32>} : memref<36x512xf32, #tpu.memory_space<vmem>>, vector<4x512xf32>,
    %c0_34 = arith.constant 0 : index
    %c32 = arith.constant 32 : index
    %44 = vector.load %arg8[%c0_34, %c32] : memref<4x546xf32, #tpu.memory_space<vmem>>, vector<4x512xf32>
    %c15_i32_35 = arith.constant 15 : i32
    %45 = vector.broadcast %c15_i32_35 : i32 to vector<4x512xi32>
    %46 = arith.cmpi slt, %0, %45 : vector<4x512xi32>
    %c1_i32_36 = arith.constant 1 : i32
    %47 = vector.broadcast %c1_i32_36 : i32 to vector<4x512xi32>
    %48 = arith.cmpi sge, %1, %47 : vector<4x512xi32>
    %49 = arith.andi %46, %48 : vector<4x512xi1>
    %cst_37 = arith.constant 0.000000e+00 : f32
    %50 = vector.broadcast %cst_37 : f32 to vector<4x512xf32>
    %51 = arith.select %49, %44, %50 : vector<4x512xi1>, vector<4x512xf32>
    %c24 = arith.constant 24 : index
    %c0_38 = arith.constant 0 : index
    %52 = vector.load %arg9[%c24, %c0_38] : memref<36x512xf32, #tpu.memory_space<vmem>>, vector<4x512xf32>
    tpu.vector_store %arg9[%c24, %c0_38], %51 {strides = array<i32>} : memref<36x512xf32, #tpu.memory_space<vmem>>, vector<4x512xf32>,
    %c0_39 = arith.constant 0 : index
    %c33 = arith.constant 33 : index
    %53 = vector.load %arg8[%c0_39, %c33] : memref<4x546xf32, #tpu.memory_space<vmem>>, vector<4x512xf32>
    %c15_i32_40 = arith.constant 15 : i32
    %54 = vector.broadcast %c15_i32_40 : i32 to vector<4x512xi32>
    %55 = arith.cmpi slt, %0, %54 : vector<4x512xi32>
    %cst_41 = arith.constant 0.000000e+00 : f32
    %56 = vector.broadcast %cst_41 : f32 to vector<4x512xf32>
    %57 = arith.select %55, %53, %56 : vector<4x512xi1>, vector<4x512xf32>
    %c28 = arith.constant 28 : index
    %c0_42 = arith.constant 0 : index
    %58 = vector.load %arg9[%c28, %c0_42] : memref<36x512xf32, #tpu.memory_space<vmem>>, vector<4x512xf32>
    tpu.vector_store %arg9[%c28, %c0_42], %57 {strides = array<i32>} : memref<36x512xf32, #tpu.memory_space<vmem>>, vector<4x512xf32>,
    %c0_43 = arith.constant 0 : index
    %c34 = arith.constant 34 : index
    %59 = vector.load %arg8[%c0_43, %c34] : memref<4x546xf32, #tpu.memory_space<vmem>>, vector<4x512xf32>
    %c15_i32_44 = arith.constant 15 : i32
    %60 = vector.broadcast %c15_i32_44 : i32 to vector<4x512xi32>
    %61 = arith.cmpi slt, %0, %60 : vector<4x512xi32>
    %c15_i32_45 = arith.constant 15 : i32
    %62 = vector.broadcast %c15_i32_45 : i32 to vector<4x512xi32>
    %63 = arith.cmpi slt, %1, %62 : vector<4x512xi32>
    %64 = arith.andi %61, %63 : vector<4x512xi1>
    %cst_46 = arith.constant 0.000000e+00 : f32
    %65 = vector.broadcast %cst_46 : f32 to vector<4x512xf32>
    %66 = arith.select %64, %59, %65 : vector<4x512xi1>, vector<4x512xf32>
    %c32_47 = arith.constant 32 : index
    %c0_48 = arith.constant 0 : index
    %67 = vector.load %arg9[%c32_47, %c0_48] : memref<36x512xf32, #tpu.memory_space<vmem>>, vector<4x512xf32>
    tpu.vector_store %arg9[%c32_47, %c0_48], %66 {strides = array<i32>} : memref<36x512xf32, #tpu.memory_space<vmem>>, vector<4x512xf32>,
    %c0_49 = arith.constant 0 : index
    %c0_50 = arith.constant 0 : index
    %68 = vector.load %arg3[%c0_49, %c0_50] : memref<4x36xf32, #tpu.memory_space<vmem>>, vector<4x36xf32>
    %69 = arith.truncf %68 : vector<4x36xf32> to vector<4x36xbf16>
    %c0_51 = arith.constant 0 : index
    %c0_52 = arith.constant 0 : index
    %70 = vector.load %arg9[%c0_51, %c0_52] : memref<36x512xf32, #tpu.memory_space<vmem>>, vector<36x512xf32>
    %71 = arith.truncf %70 : vector<36x512xf32> to vector<36x512xbf16>
    %cst_53 = arith.constant dense<0.000000e+00> : vector<4x512xf32>
    %72 = tpu.matmul %69, %71, %cst_53 {dimension_numbers = #tpu.dot_dimension_numbers<[1], [0], [0], [1], [0, 0, 1, 1], [], []>} : vector<4x36xbf16>, vector<36x512xbf16>, vector<4x512xf32> -> vector<4x512xf32>
    %cst_54 = arith.constant dense<0.000000e+00> : vector<4xf32>
    %73 = vector.multi_reduction <add>, %72, %cst_54 [1] : vector<4x512xf32> to vector<4xf32>
    %74 = vector.shape_cast %73 : vector<4xf32> to vector<4x1xf32>
    %cst_55 = arith.constant 5.120000e+02 : f32
    %75 = vector.broadcast %cst_55 : f32 to vector<4x1xf32>
    %76 = arith.divf %74, %75 : vector<4x1xf32>
    %77 = vector.broadcast %76 : vector<4x1xf32> to vector<4x512xf32>
    %78 = arith.subf %72, %77 : vector<4x512xf32>
    %79 = arith.mulf %78, %78 : vector<4x512xf32>
    %cst_56 = arith.constant dense<0.000000e+00> : vector<4xf32>
    %80 = vector.multi_reduction <add>, %79, %cst_56 [1] : vector<4x512xf32> to vector<4xf32>
    %81 = vector.shape_cast %80 : vector<4xf32> to vector<4x1xf32>
    %cst_57 = arith.constant 5.120000e+02 : f32
    %82 = vector.broadcast %cst_57 : f32 to vector<4x1xf32>
    %83 = arith.divf %81, %82 : vector<4x1xf32>
    %cst_58 = arith.constant 9.99999974E-6 : f32
    %84 = vector.broadcast %cst_58 : f32 to vector<4x1xf32>
    %85 = arith.addf %83, %84 : vector<4x1xf32>
    %86 = math.rsqrt %85 : vector<4x1xf32>
    %87 = vector.broadcast %86 : vector<4x1xf32> to vector<4x512xf32>
    %88 = arith.mulf %78, %87 : vector<4x512xf32>
    %c0_59 = arith.constant 0 : index
    %c0_60 = arith.constant 0 : index
    %89 = vector.load %arg4[%c0_59, %c0_60] : memref<4x1xf32, #tpu.memory_space<vmem>>, vector<4x1xf32>
    %90 = vector.broadcast %89 : vector<4x1xf32> to vector<4x512xf32>
    %91 = arith.addf %88, %90 : vector<4x512xf32>
    %cst_61 = arith.constant 0.000000e+00 : f32
    %92 = vector.broadcast %cst_61 : f32 to vector<4x512xf32>
    %93 = arith.maximumf %91, %92 : vector<4x512xf32>
    %c0_62 = arith.constant 0 : index
    %c17_63 = arith.constant 17 : index
    %94 = vector.load %arg8[%c0_62, %c17_63] : memref<4x546xf32, #tpu.memory_space<vmem>>, vector<4x512xf32>
    tpu.vector_store %arg8[%c0_62, %c17_63], %93 {strides = array<i32>} : memref<4x546xf32, #tpu.memory_space<vmem>>, vector<4x512xf32>,
    %c0_64 = arith.constant 0 : index
    %c0_65 = arith.constant 0 : index
    %95 = vector.load %arg8[%c0_64, %c0_65] : memref<4x546xf32, #tpu.memory_space<vmem>>, vector<4x512xf32>
    %c1_i32_66 = arith.constant 1 : i32
    %96 = vector.broadcast %c1_i32_66 : i32 to vector<4x512xi32>
    %97 = arith.cmpi sge, %0, %96 : vector<4x512xi32>
    %c1_i32_67 = arith.constant 1 : i32
    %98 = vector.broadcast %c1_i32_67 : i32 to vector<4x512xi32>
    %99 = arith.cmpi sge, %1, %98 : vector<4x512xi32>
    %100 = arith.andi %97, %99 : vector<4x512xi1>
    %cst_68 = arith.constant 0.000000e+00 : f32
    %101 = vector.broadcast %cst_68 : f32 to vector<4x512xf32>
    %102 = arith.select %100, %95, %101 : vector<4x512xi1>, vector<4x512xf32>
    %c0_69 = arith.constant 0 : index
    %c0_70 = arith.constant 0 : index
    %103 = vector.load %arg9[%c0_69, %c0_70] : memref<36x512xf32, #tpu.memory_space<vmem>>, vector<4x512xf32>
    tpu.vector_store %arg9[%c0_69, %c0_70], %102 {strides = array<i32>} : memref<36x512xf32, #tpu.memory_space<vmem>>, vector<4x512xf32>,
    %c0_71 = arith.constant 0 : index
    %c1_72 = arith.constant 1 : index
    %104 = vector.load %arg8[%c0_71, %c1_72] : memref<4x546xf32, #tpu.memory_space<vmem>>, vector<4x512xf32>
    %c1_i32_73 = arith.constant 1 : i32
    %105 = vector.broadcast %c1_i32_73 : i32 to vector<4x512xi32>
    %106 = arith.cmpi sge, %0, %105 : vector<4x512xi32>
    %cst_74 = arith.constant 0.000000e+00 : f32
    %107 = vector.broadcast %cst_74 : f32 to vector<4x512xf32>
    %108 = arith.select %106, %104, %107 : vector<4x512xi1>, vector<4x512xf32>
    %c4_75 = arith.constant 4 : index
    %c0_76 = arith.constant 0 : index
    %109 = vector.load %arg9[%c4_75, %c0_76] : memref<36x512xf32, #tpu.memory_space<vmem>>, vector<4x512xf32>
    tpu.vector_store %arg9[%c4_75, %c0_76], %108 {strides = array<i32>} : memref<36x512xf32, #tpu.memory_space<vmem>>, vector<4x512xf32>,
    %c0_77 = arith.constant 0 : index
    %c2_78 = arith.constant 2 : index
    %110 = vector.load %arg8[%c0_77, %c2_78] : memref<4x546xf32, #tpu.memory_space<vmem>>, vector<4x512xf32>
    %c1_i32_79 = arith.constant 1 : i32
    %111 = vector.broadcast %c1_i32_79 : i32 to vector<4x512xi32>
    %112 = arith.cmpi sge, %0, %111 : vector<4x512xi32>
    %c15_i32_80 = arith.constant 15 : i32
    %113 = vector.broadcast %c15_i32_80 : i32 to vector<4x512xi32>
    %114 = arith.cmpi slt, %1, %113 : vector<4x512xi32>
    %115 = arith.andi %112, %114 : vector<4x512xi1>
    %cst_81 = arith.constant 0.000000e+00 : f32
    %116 = vector.broadcast %cst_81 : f32 to vector<4x512xf32>
    %117 = arith.select %115, %110, %116 : vector<4x512xi1>, vector<4x512xf32>
    %c8_82 = arith.constant 8 : index
    %c0_83 = arith.constant 0 : index
    %118 = vector.load %arg9[%c8_82, %c0_83] : memref<36x512xf32, #tpu.memory_space<vmem>>, vector<4x512xf32>
    tpu.vector_store %arg9[%c8_82, %c0_83], %117 {strides = array<i32>} : memref<36x512xf32, #tpu.memory_space<vmem>>, vector<4x512xf32>,
    %c0_84 = arith.constant 0 : index
    %c16_85 = arith.constant 16 : index
    %119 = vector.load %arg8[%c0_84, %c16_85] : memref<4x546xf32, #tpu.memory_space<vmem>>, vector<4x512xf32>
    %c1_i32_86 = arith.constant 1 : i32
    %120 = vector.broadcast %c1_i32_86 : i32 to vector<4x512xi32>
    %121 = arith.cmpi sge, %1, %120 : vector<4x512xi32>
    %cst_87 = arith.constant 0.000000e+00 : f32
    %122 = vector.broadcast %cst_87 : f32 to vector<4x512xf32>
    %123 = arith.select %121, %119, %122 : vector<4x512xi1>, vector<4x512xf32>
    %c12_88 = arith.constant 12 : index
    %c0_89 = arith.constant 0 : index
    %124 = vector.load %arg9[%c12_88, %c0_89] : memref<36x512xf32, #tpu.memory_space<vmem>>, vector<4x512xf32>
    tpu.vector_store %arg9[%c12_88, %c0_89], %123 {strides = array<i32>} : memref<36x512xf32, #tpu.memory_space<vmem>>, vector<4x512xf32>,
    %c0_90 = arith.constant 0 : index
    %c17_91 = arith.constant 17 : index
    %125 = vector.load %arg8[%c0_90, %c17_91] : memref<4x546xf32, #tpu.memory_space<vmem>>, vector<4x512xf32>
    %c16_92 = arith.constant 16 : index
    %c0_93 = arith.constant 0 : index
    %126 = vector.load %arg9[%c16_92, %c0_93] : memref<36x512xf32, #tpu.memory_space<vmem>>, vector<4x512xf32>
    tpu.vector_store %arg9[%c16_92, %c0_93], %125 {strides = array<i32>} : memref<36x512xf32, #tpu.memory_space<vmem>>, vector<4x512xf32>,
    %c0_94 = arith.constant 0 : index
    %c18_95 = arith.constant 18 : index
    %127 = vector.load %arg8[%c0_94, %c18_95] : memref<4x546xf32, #tpu.memory_space<vmem>>, vector<4x512xf32>
    %c15_i32_96 = arith.constant 15 : i32
    %128 = vector.broadcast %c15_i32_96 : i32 to vector<4x512xi32>
    %129 = arith.cmpi slt, %1, %128 : vector<4x512xi32>
    %cst_97 = arith.constant 0.000000e+00 : f32
    %130 = vector.broadcast %cst_97 : f32 to vector<4x512xf32>
    %131 = arith.select %129, %127, %130 : vector<4x512xi1>, vector<4x512xf32>
    %c20_98 = arith.constant 20 : index
    %c0_99 = arith.constant 0 : index
    %132 = vector.load %arg9[%c20_98, %c0_99] : memref<36x512xf32, #tpu.memory_space<vmem>>, vector<4x512xf32>
    tpu.vector_store %arg9[%c20_98, %c0_99], %131 {strides = array<i32>} : memref<36x512xf32, #tpu.memory_space<vmem>>, vector<4x512xf32>,
    %c0_100 = arith.constant 0 : index
    %c32_101 = arith.constant 32 : index
    %133 = vector.load %arg8[%c0_100, %c32_101] : memref<4x546xf32, #tpu.memory_space<vmem>>, vector<4x512xf32>
    %c15_i32_102 = arith.constant 15 : i32
    %134 = vector.broadcast %c15_i32_102 : i32 to vector<4x512xi32>
    %135 = arith.cmpi slt, %0, %134 : vector<4x512xi32>
    %c1_i32_103 = arith.constant 1 : i32
    %136 = vector.broadcast %c1_i32_103 : i32 to vector<4x512xi32>
    %137 = arith.cmpi sge, %1, %136 : vector<4x512xi32>
    %138 = arith.andi %135, %137 : vector<4x512xi1>
    %cst_104 = arith.constant 0.000000e+00 : f32
    %139 = vector.broadcast %cst_104 : f32 to vector<4x512xf32>
    %140 = arith.select %138, %133, %139 : vector<4x512xi1>, vector<4x512xf32>
    %c24_105 = arith.constant 24 : index
    %c0_106 = arith.constant 0 : index
    %141 = vector.load %arg9[%c24_105, %c0_106] : memref<36x512xf32, #tpu.memory_space<vmem>>, vector<4x512xf32>
    tpu.vector_store %arg9[%c24_105, %c0_106], %140 {strides = array<i32>} : memref<36x512xf32, #tpu.memory_space<vmem>>, vector<4x512xf32>,
    %c0_107 = arith.constant 0 : index
    %c33_108 = arith.constant 33 : index
    %142 = vector.load %arg8[%c0_107, %c33_108] : memref<4x546xf32, #tpu.memory_space<vmem>>, vector<4x512xf32>
    %c15_i32_109 = arith.constant 15 : i32
    %143 = vector.broadcast %c15_i32_109 : i32 to vector<4x512xi32>
    %144 = arith.cmpi slt, %0, %143 : vector<4x512xi32>
    %cst_110 = arith.constant 0.000000e+00 : f32
    %145 = vector.broadcast %cst_110 : f32 to vector<4x512xf32>
    %146 = arith.select %144, %142, %145 : vector<4x512xi1>, vector<4x512xf32>
    %c28_111 = arith.constant 28 : index
    %c0_112 = arith.constant 0 : index
    %147 = vector.load %arg9[%c28_111, %c0_112] : memref<36x512xf32, #tpu.memory_space<vmem>>, vector<4x512xf32>
    tpu.vector_store %arg9[%c28_111, %c0_112], %146 {strides = array<i32>} : memref<36x512xf32, #tpu.memory_space<vmem>>, vector<4x512xf32>,
    %c0_113 = arith.constant 0 : index
    %c34_114 = arith.constant 34 : index
    %148 = vector.load %arg8[%c0_113, %c34_114] : memref<4x546xf32, #tpu.memory_space<vmem>>, vector<4x512xf32>
    %c15_i32_115 = arith.constant 15 : i32
    %149 = vector.broadcast %c15_i32_115 : i32 to vector<4x512xi32>
    %150 = arith.cmpi slt, %0, %149 : vector<4x512xi32>
    %c15_i32_116 = arith.constant 15 : i32
    %151 = vector.broadcast %c15_i32_116 : i32 to vector<4x512xi32>
    %152 = arith.cmpi slt, %1, %151 : vector<4x512xi32>
    %153 = arith.andi %150, %152 : vector<4x512xi1>
    %cst_117 = arith.constant 0.000000e+00 : f32
    %154 = vector.broadcast %cst_117 : f32 to vector<4x512xf32>
    %155 = arith.select %153, %148, %154 : vector<4x512xi1>, vector<4x512xf32>
    %c32_118 = arith.constant 32 : index
    %c0_119 = arith.constant 0 : index
    %156 = vector.load %arg9[%c32_118, %c0_119] : memref<36x512xf32, #tpu.memory_space<vmem>>, vector<4x512xf32>
    tpu.vector_store %arg9[%c32_118, %c0_119], %155 {strides = array<i32>} : memref<36x512xf32, #tpu.memory_space<vmem>>, vector<4x512xf32>,
    %c0_120 = arith.constant 0 : index
    %c0_121 = arith.constant 0 : index
    %157 = vector.load %arg5[%c0_120, %c0_121] : memref<4x36xf32, #tpu.memory_space<vmem>>, vector<4x36xf32>
    %158 = arith.truncf %157 : vector<4x36xf32> to vector<4x36xbf16>
    %c0_122 = arith.constant 0 : index
    %c0_123 = arith.constant 0 : index
    %159 = vector.load %arg9[%c0_122, %c0_123] : memref<36x512xf32, #tpu.memory_space<vmem>>, vector<36x512xf32>
    %160 = arith.truncf %159 : vector<36x512xf32> to vector<36x512xbf16>
    %cst_124 = arith.constant dense<0.000000e+00> : vector<4x512xf32>
    %161 = tpu.matmul %158, %160, %cst_124 {dimension_numbers = #tpu.dot_dimension_numbers<[1], [0], [0], [1], [0, 0, 1, 1], [], []>} : vector<4x36xbf16>, vector<36x512xbf16>, vector<4x512xf32> -> vector<4x512xf32>
    %cst_125 = arith.constant dense<0.000000e+00> : vector<4xf32>
    %162 = vector.multi_reduction <add>, %161, %cst_125 [1] : vector<4x512xf32> to vector<4xf32>
    %163 = vector.shape_cast %162 : vector<4xf32> to vector<4x1xf32>
    %cst_126 = arith.constant 5.120000e+02 : f32
    %164 = vector.broadcast %cst_126 : f32 to vector<4x1xf32>
    %165 = arith.divf %163, %164 : vector<4x1xf32>
    %166 = vector.broadcast %165 : vector<4x1xf32> to vector<4x512xf32>
    %167 = arith.subf %161, %166 : vector<4x512xf32>
    %168 = arith.mulf %167, %167 : vector<4x512xf32>
    %cst_127 = arith.constant dense<0.000000e+00> : vector<4xf32>
    %169 = vector.multi_reduction <add>, %168, %cst_127 [1] : vector<4x512xf32> to vector<4xf32>
    %170 = vector.shape_cast %169 : vector<4xf32> to vector<4x1xf32>
    %cst_128 = arith.constant 5.120000e+02 : f32
    %171 = vector.broadcast %cst_128 : f32 to vector<4x1xf32>
    %172 = arith.divf %170, %171 : vector<4x1xf32>
    %cst_129 = arith.constant 9.99999974E-6 : f32
    %173 = vector.broadcast %cst_129 : f32 to vector<4x1xf32>
    %174 = arith.addf %172, %173 : vector<4x1xf32>
    %175 = math.rsqrt %174 : vector<4x1xf32>
    %176 = vector.broadcast %175 : vector<4x1xf32> to vector<4x512xf32>
    %177 = arith.mulf %167, %176 : vector<4x512xf32>
    %c0_130 = arith.constant 0 : index
    %c0_131 = arith.constant 0 : index
    %178 = vector.load %arg6[%c0_130, %c0_131] : memref<4x1xf32, #tpu.memory_space<vmem>>, vector<4x1xf32>
    %179 = vector.broadcast %178 : vector<4x1xf32> to vector<4x512xf32>
    %180 = arith.addf %177, %179 : vector<4x512xf32>
    %181 = arith.addf %180, %4 : vector<4x512xf32>
    %cst_132 = arith.constant 0.000000e+00 : f32
    %182 = vector.broadcast %cst_132 : f32 to vector<4x512xf32>
    %183 = arith.maximumf %181, %182 : vector<4x512xf32>
    %c0_133 = arith.constant 0 : index
    %c0_134 = arith.constant 0 : index
    %184 = vector.load %arg7[%c0_133, %c0_134] : memref<4x512xf32, #tpu.memory_space<vmem>>, vector<4x512xf32>
    tpu.vector_store %arg7[%c0_133, %c0_134], %183 {strides = array<i32>} : memref<4x512xf32, #tpu.memory_space<vmem>>, vector<4x512xf32>,
    return
  }
}

</mosaic_0001>

<bundles_post_ra>
// kernel: basic_block.1
= control target key start
LH: loop header
LB: loop body
LE: loop exit
PB: predicated region body
PF: predicated region fallthrough
CT: control target
= control target key end

     0   :  { %v1068_v1 = vmov 0.0   ;;  %vm33_vm0 = vcmask 273408   ;;  %s1069_s26 = smov 17   ;;  %vm53_vm1 = vcmask 1043592   ;;  %vm54_vm2 = vcmask 1047556   ;;  %s1072_s14 = smov 112   ;;  %s1536_s0 = inlined_call_operand.vmem [shape: f32[4,512], index: 0, kind: input, shape index: {}]   ;;  %s1537_s1 = inlined_call_operand.vmem [shape: s32[4,512], index: 1, kind: input, shape index: {}]   ;;  %s1538_s2 = inlined_call_operand.vmem [shape: s32[4,512], index: 2, kind: input, shape index: {}]   ;;  %s1539_s3 = inlined_call_operand.vmem [shape: f32[4,36], index: 3, kind: input, shape index: {}]   ;;  %s1540_s4 = inlined_call_operand.vmem [shape: f32[4,1], index: 4, kind: input, shape index: {}]   ;;  %s1541_s5 = inlined_call_operand.vmem [shape: f32[4,36], index: 5, kind: input, shape index: {}]   ;;  %s1542_s6 = inlined_call_operand.vmem [shape: f32[4,1], index: 6, kind: input, shape index: {}]   ;;  %s1543_s7 = inlined_call_operand.vmem [shape: f32[4,512], index: 7, kind: output, shape index: {}]  }
   0x1   :  { %v35_v0 = vld [vmem:[%s1536_s0] sm:$0xff]  ;;  %31 = vst [vmem:[#allocation2] sm:$0xff] %v1068_v1  ;;  %34 = vst.msk [vmem:[#allocation2 + $0x10] sm:$0xf] %vm33_vm0, %v1068_v1  ;;  %v36_v2 = vld [vmem:[%s1536_s0 + $0x8] sm:$0xff]  ;;  %vm1545_vm3 = vcmask 138240  }
   0x2   :  { %39 = vrot.lane.b32.xlu0 %v35_v0, %s1069_s26  ;;  %v1130_v4 = vld [vmem:[%s1537_s1 + $0x8] sm:$0xff]  ;;  %vm1137_vm4 = vmor %vm54_vm2, %vm53_vm1  ;;  %v1145_v9 = vld [vmem:[%s1537_s1] sm:$0xff]  ;;  %vm1555_vm7 = vcmask 1043456   ;;  %vm1544_vm8 = vcmask 134144   ;;  %s1070_s1 = smov 126   ;;  %s1073_s15 = smov 96  }
   0x3   :  { %v1135_v5 = vld [vmem:[%s1538_s2 + $0x8] sm:$0xff]  ;;  %v1150_v10 = vld [vmem:[%s1538_s2] sm:$0xff]  ;;  %vm1546_vm6 = vcmp.ge.s32.totalorder %v1130_v4, 1  ;;  %vm1552_vm9 = vcmp.ge.s32.totalorder %v1145_v9, 1  ;;  %s1071_s2 = smov 127   ;;  %s1074_s16 = smov 110  }
   0x4   :  { %vm1549_vm5 = vcmp.ge.s32.totalorder %v1135_v5, 1  ;;  %vm1547_vm10 = vcmp.ge.s32.totalorder %v1150_v10, 1  ;;  %s1075_s17 = smov 95   ;;  %s1076_s18 = smov 94   ;;  %v1078_v32 = vmov 0   ;;  %vm1548_vm13 = vcmp.lt.s32.totalorder %v1145_v9, 15 }
   0x5   :  { %vm1162_vm11 = vmand %vm1546_vm6, %vm1549_vm5  ;;  %s1077_s19 = smov 111   ;;  %442 = vmatprep.mubr.bf16.mxu0 %v1078_v32  ;;  %483 = vmatprep.mubr.bf16.mxu1 %v1078_v32  ;;  %vm1551_vm14 = vcmp.lt.s32.totalorder %v1130_v4, 15  ;;  %v1569_v51 = vmov 0  ;;  %vm1550_vm0 = vcmask 785408   ;;  %vm1557_vm1 = vcmp.lt.s32.totalorder %v1150_v10, 15 }
   0x6   :  { %41 = vrot.lane.b32.xlu0 %v36_v2, %s1069_s26  ;;  %vm1173_vm12 = vmand %vm1552_vm9, %vm1547_vm10  ;;  %v1571_v53 = vmov 0  ;;  %vm1554_vm6 = vcmask 1031168  }
   0x7   :  { %1057 = vset.pattern.permute.xlu0 %v1078_v32  ;;  %vm1234_vm15 = vmand %vm1548_vm13, %vm1547_vm10  ;;  %vm1556_vm10 = vcmask 777216   ;;  %vm1558_vm13 = vcmask 1039360  }
   0x8   :  { %v1570_v51 = vsel %vm1234_vm15, 4294967295, %v1569_v51  ;;  %vm1243_vm2 = vmand %vm1551_vm14, %vm1549_vm5 }
   0x9   :  { %v1572_v53 = vsel %vm1243_vm2, 4294967295, %v1571_v53  ;;  %vm1260_vm5 = vmand %vm1552_vm9, %vm1557_vm1  ;;  %vm1559_vm9 = vcmask 908288  }
  0x74   :  { %v40_v3 = vpop.permute.xlu0 %39 }
  0x75   :  { %v43_v7 = vrot.slane %v40_v3, 4 }
  0x77   :  { %v46_v8 = vsel %vm1545_vm3, %v43_v7, %v40_v3 }
  0x78   :  { %56 = vst.msk [vmem:[#allocation2] sm:$0xff] %vm1137_vm4, %v46_v8  ;;  %v42_v11 = vpop.permute.xlu0 %41 }
  0x79   :  { %v44_v12 = vrot.slane %v42_v11, 4 }
  0x7b   :  { %v48_v14 = vsel %vm1555_vm7, %v43_v7, %v44_v12  ;;  %59 = vst.msk [vmem:[#allocation2 + $0x10] sm:$0xf] %vm1544_vm8, %v44_v12  ;;  %vm1562_vm8 = vcmp.lt.s32.totalorder %v1135_v5, 15 }
  0x7c   :  { %v49_v15 = vsel %vm1545_vm3, %v48_v14, %v42_v11  ;;  %vm1553_vm3 = vcmask 900096  }
  0x7d   :  { %v69_v17 = vsel %vm1162_vm11, %v49_v15, 0.0  ;;  %v193_v30 = vcombine.high %v49_v15, %v49_v15 }
  0x7e   :  { %v73_v18 = vcombine.high %v69_v17, %v69_v17  ;;  %78 = vst [vmem:[#allocation3 + $0x10] sm:$0xf] %v69_v17 }
  0x7f   :  { %v80_v19 = vld [vmem:[#allocation2] sm:$0xff] }
  0x80   :  { %v68_v20 = vsel %vm1173_vm12, %v80_v19, 0.0  ;;  %79 = vst [vmem:[#allocation3 + $0x18] sm:$0xf] %v73_v18  ;;  %v192_v29 = vcombine.high %v80_v19, %v80_v19 }
  0x81   :  { %v72_v21 = vcombine.high %v68_v20, %v68_v20  ;;  %76 = vst [vmem:[#allocation3] sm:$0xf] %v68_v20 }
  0x82   :  { %v116_v22 = vld [vmem:[#allocation2 + $0x10] sm:$0xf] }
  0x83   :  { %v82_v23 = vld [vmem:[#allocation2 + $0x10] sm:$0xf]  ;;  %128 = vrot.lane.b32.xlu0 %v116_v22, %s1070_s1  ;;  %77 = vst [vmem:[#allocation3 + $0x8] sm:$0xf] %v72_v21 }
  0x84   :  { %90 = vrot.lane.b32.xlu1 %v82_v23, %s1071_s2  ;;  %v154_v24 = vld [vmem:[#allocation2 + $0x10] sm:$0xf] }
  0x85   :  { %v253_v25 = vld [vmem:[#allocation2 + $0x10] sm:$0xf] }
  0x86   :  { %v219_v26 = vld [vmem:[#allocation2 + $0x10] sm:$0xf] }
  0x87   :  { %162 = vrot.lane.b32.xlu0 %v154_v24, %s1072_s14  ;;  %v291_v27 = vld [vmem:[#allocation2 + $0x10] sm:$0xf] }
  0x88   :  { %265 = vrot.lane.b32.xlu1 %v253_v25, %s1073_s15  ;;  %v325_v28 = vld [vmem:[#allocation2 + $0x10] sm:$0xf] }
  0x89   :  { %v188_v31 = vld [vmem:[#allocation2 + $0x10] sm:$0xf] }
  0x8b   :  { %227 = vrot.lane.b32.xlu0 %v219_v26, %s1074_s16 }
  0x8c   :  { %299 = vrot.lane.b32.xlu1 %v291_v27, %s1075_s17 }
  0x8f   :  { %86 = vrot.lane.b32.xlu0 %v80_v19, %s1071_s2 }
  0x90   :  { %335 = vrot.lane.b32.xlu1 %v325_v28, %s1076_s18 }
  0x93   :  { %158 = vrot.lane.b32.xlu0 %v80_v19, %s1072_s14 }
  0x94   :  { %124 = vrot.lane.b32.xlu1 %v80_v19, %s1070_s1 }
  0x97   :  { %331 = vrot.lane.b32.xlu0 %v80_v19, %s1076_s18 }
  0x98   :  { %261 = vrot.lane.b32.xlu1 %v80_v19, %s1073_s15 }
  0x9b   :  { %194 = vrot.lane.b32.xlu0 %v80_v19, %s1077_s19 }
  0x9c   :  { %223 = vrot.lane.b32.xlu1 %v80_v19, %s1074_s16 }
  0x9f   :  { %263 = vrot.lane.b32.xlu0 %v49_v15, %s1073_s15 }
  0xa0   :  { %295 = vrot.lane.b32.xlu1 %v80_v19, %s1075_s17 }
  0xa3   :  { %225 = vrot.lane.b32.xlu0 %v49_v15, %s1074_s16 }
  0xa4   :  { %126 = vrot.lane.b32.xlu1 %v49_v15, %s1070_s1 }
  0xa7   :  { %297 = vrot.lane.b32.xlu0 %v49_v15, %s1075_s17 }
  0xa8   :  { %88 = vrot.lane.b32.xlu1 %v49_v15, %s1071_s2 }
  0xab   :  { %196 = vrot.lane.b32.xlu0 %v192_v29, %s1077_s19 }
  0xac   :  { %160 = vrot.lane.b32.xlu1 %v49_v15, %s1072_s14 }
  0xaf   :  { %200 = vrot.lane.b32.xlu0 %v193_v30, %s1077_s19 }
  0xb0   :  { %333 = vrot.lane.b32.xlu1 %v49_v15, %s1076_s18 }
  0xb4   :  { %198 = vrot.lane.b32.xlu1 %v49_v15, %s1077_s19 }
  0xb8   :  { %202 = vrot.lane.b32.xlu1 %v188_v31, %s1077_s19 }
  0xf5   :  { %v129_v33 = vpop.permute.xlu0 %128 }
  0xf6   :  { %v1210_v34 = vpop.permute.xlu1 %90  ;;  %v132_v54 = vrot.slane %v129_v33, 4 }
  0xf7   :  { %v94_v8 = vrot.slane %v1210_v34, 4 }
  0xf9   :  { %v1212_v35 = vpop.permute.xlu0 %162 }
  0xfa   :  { %v266_v36 = vpop.permute.xlu1 %265 }
  0xfb   :  { %v269_v49 = vrot.slane %v266_v36, 4 }
  0xfd   :  { %v228_v37 = vpop.permute.xlu0 %227 }
  0xfe   :  { %v1214_v38 = vpop.permute.xlu1 %299  ;;  %v231_v55 = vrot.slane %v228_v37, 4 }
  0xff   :  { %v303_v11 = vrot.slane %v1214_v38, 4 }
 0x101   :  { %v1216_v39 = vpop.permute.xlu0 %86 }
 0x102   :  { %v1218_v40 = vpop.permute.xlu1 %335  ;;  %v92_v37 = vrot.slane %v1216_v39, 4 }
 0x105   :  { %v1220_v41 = vpop.permute.xlu0 %158 }
 0x106   :  { %v125_v42 = vpop.permute.xlu1 %124 }
 0x107   :  { %v130_v58 = vrot.slane %v125_v42, 4 }
 0x109   :  { %v1222_v43 = vpop.permute.xlu0 %331 }
 0x10a   :  { %v262_v44 = vpop.permute.xlu1 %261 }
 0x10b   :  { %v267_v50 = vrot.slane %v262_v44, 4 }
 0x10d   :  { %v1224_v45 = vpop.permute.xlu0 %194 }
 0x10e   :  { %v224_v46 = vpop.permute.xlu1 %223 }
 0x10f   :  { %v229_v59 = vrot.slane %v224_v46, 4 }
 0x111   :  { %v264_v48 = vpop.permute.xlu0 %263 }
 0x112   :  { %v1228_v47 = vpop.permute.xlu1 %295  ;;  %v268_v52 = vrot.slane %v264_v48, 4 }
 0x113   :  { %v301_v38 = vrot.slane %v1228_v47, 4 }
 0x114   :  { %v270_v56 = vsel %vm1555_vm7, %v267_v50, %v268_v52  ;;  %v273_v57 = vsel %vm1555_vm7, %v268_v52, %v269_v49  ;;  %v164_v49 = vrot.slane %v1220_v41, 4 }
 0x115   :  { %v272_v60 = vsel %vm1550_vm0, %v262_v44, %v270_v56  ;;  %v274_v61 = vsel %vm1550_vm0, %v264_v48, %v273_v57  ;;  %v226_v62 = vpop.permute.xlu0 %225  ;;  %vm1575_vm0 = vcmp.ge.s32.totalorder %v1130_v4, 1  ;;  %v339_v48 = vrot.slane %v1218_v40, 4 }
 0x116   :  { %v127_v63 = vpop.permute.xlu1 %126  ;;  %v277_v0 = vsel %vm1234_vm15, %v272_v60, 0.0  ;;  %v278_v1 = vsel %vm1243_vm2, %v274_v61, 0.0  ;;  %v230_v2 = vrot.slane %v226_v62, 4  ;;  %vm1270_vm14 = vmand %vm1575_vm0, %vm1562_vm8  ;;  %vm1580_vm0 = vcmp.ge.s32.totalorder %v1145_v9, 1 }
 0x117   :  { %v131_v7 = vrot.slane %v127_v63, 4  ;;  %v281_v12 = vcombine.high %v277_v0, %v277_v0  ;;  %v282_v14 = vcombine.high %v278_v1, %v278_v1  ;;  %285 = vst [vmem:[#allocation3 + $0x60] sm:$0xf] %v277_v0  ;;  %287 = vst [vmem:[#allocation3 + $0x70] sm:$0xf] %v278_v1  ;;  %vm1594_vm15 = vcmask 769024  }
 0x118   :  { %v232_v17 = vsel %vm1555_vm7, %v229_v59, %v230_v2  ;;  %v235_v18 = vsel %vm1555_vm7, %v230_v2, %v231_v55 }
 0x119   :  { %v133_v19 = vsel %vm1555_vm7, %v130_v58, %v131_v7  ;;  %v136_v20 = vsel %vm1555_vm7, %v131_v7, %v132_v54  ;;  %286 = vst [vmem:[#allocation3 + $0x68] sm:$0xf] %v281_v12  ;;  %288 = vst [vmem:[#allocation3 + $0x78] sm:$0xf] %v282_v14  ;;  %v234_v21 = vsel %vm1553_vm3, %v224_v46, %v232_v17  ;;  %v298_v25 = vpop.permute.xlu0 %297  ;;  %v166_v46 = vrot.slane %v1212_v35, 4 }
 0x11a   :  { %v236_v22 = vsel %vm1553_vm3, %v226_v62, %v235_v18  ;;  %v135_v23 = vsel %vm1554_vm6, %v125_v42, %v133_v19  ;;  %v137_v24 = vsel %vm1554_vm6, %v127_v63, %v136_v20  ;;  %v89_v26 = vpop.permute.xlu1 %88  ;;  %v239_v27 = vsel %vm1557_vm1, %v234_v21, 0.0 }
 0x11b   :  { %v240_v28 = vsel %vm1562_vm8, %v236_v22, 0.0  ;;  %v140_v29 = vsel %vm1260_vm5, %v135_v23, 0.0  ;;  %v141_v30 = vsel %vm1270_vm14, %v137_v24, 0.0  ;;  %v243_v31 = vcombine.low %v239_v27, %v239_v27  ;;  %248 = vst [vmem:[#allocation3 + $0x48] sm:$0xf0] %v239_v27 }
 0x11c   :  { %v244_v33 = vcombine.low %v240_v28, %v240_v28  ;;  %250 = vst [vmem:[#allocation3 + $0x58] sm:$0xf0] %v240_v28  ;;  %v144_v34 = vcombine.high %v140_v29, %v140_v29  ;;  %v145_v36 = vcombine.high %v141_v30, %v141_v30  ;;  %148 = vst [vmem:[#allocation3 + $0x20] sm:$0xf] %v140_v29  ;;  %v302_v42 = vrot.slane %v298_v25, 4 }
 0x11d   :  { %150 = vst [vmem:[#allocation3 + $0x30] sm:$0xf] %v141_v30  ;;  %v93_v44 = vrot.slane %v89_v26, 4  ;;  %247 = vst [vmem:[#allocation3 + $0x40] sm:$0xf0] %v243_v31  ;;  %v197_v59 = vpop.permute.xlu0 %196  ;;  %vm1578_vm6 = vcmp.lt.s32.totalorder %v1145_v9, 15 }
 0x11e   :  { %249 = vst [vmem:[#allocation3 + $0x50] sm:$0xf0] %v244_v33  ;;  %149 = vst [vmem:[#allocation3 + $0x28] sm:$0xf] %v144_v34  ;;  %v161_v50 = vpop.permute.xlu1 %160  ;;  %v304_v52 = vsel %vm1555_vm7, %v301_v38, %v302_v42  ;;  %v307_v54 = vsel %vm1555_vm7, %v302_v42, %v303_v11  ;;  %vm1579_vm3 = vcmp.lt.s32.totalorder %v1130_v4, 15  ;;  %v337_v7 = vrot.slane %v1222_v43, 4 }
 0x11f   :  { %151 = vst [vmem:[#allocation3 + $0x38] sm:$0xf] %v145_v36  ;;  %v95_v55 = vsel %vm1555_vm7, %v92_v37, %v93_v44  ;;  %v98_v56 = vsel %vm1555_vm7, %v93_v44, %v94_v8  ;;  %v306_v35 = vsel %vm1556_vm10, %v1228_v47, %v304_v52  ;;  %v308_v40 = vsel %vm1556_vm10, %v298_v25, %v307_v54 }
 0x120   :  { %v97_v57 = vsel %vm1558_vm13, %v1216_v39, %v95_v55  ;;  %v99_v58 = vsel %vm1558_vm13, %v89_v26, %v98_v56  ;;  %v311_v60 = vsel %vm1578_vm6, %v306_v35, 0.0  ;;  %v312_v61 = vsel %vm1579_vm3, %v308_v40, 0.0  ;;  %vm1582_vm3 = vmmov %vm1578_vm6 }
 0x121   :  { %v102_v62 = vsel %vm1580_vm0, %v97_v57, 0.0  ;;  %vm1581_vm7 = vcmp.ge.s32.totalorder %v1130_v4, 1  ;;  %v315_v63 = vcombine.low %v311_v60, %v311_v60  ;;  %v316_v0 = vcombine.low %v312_v61, %v312_v61  ;;  %320 = vst [vmem:[#allocation3 + $0x68] sm:$0xf0] %v311_v60  ;;  %322 = vst [vmem:[#allocation3 + $0x78] sm:$0xf0] %v312_v61 }
 0x122   :  { %v103_v47 = vsel %vm1581_vm7, %v99_v58, 0.0  ;;  %v106_v39 = vcombine.low %v102_v62, %v102_v62  ;;  %111 = vst [vmem:[#allocation3 + $0x8] sm:$0xf0] %v102_v62  ;;  %v334_v2 = vpop.permute.xlu1 %333  ;;  %v205_v8 = vsel %vm1559_vm9, %v1224_v45, %v197_v59  ;;  %v165_v11 = vrot.slane %v161_v50, 4  ;;  %vm1320_vm6 = vmand %vm1582_vm3, %vm1557_vm1 }
 0x123   :  { %v107_v1 = vcombine.low %v103_v47, %v103_v47  ;;  %113 = vst [vmem:[#allocation3 + $0x18] sm:$0xf0] %v103_v47  ;;  %v338_v14 = vrot.slane %v334_v2, 4  ;;  %319 = vst [vmem:[#allocation3 + $0x60] sm:$0xf0] %v315_v63  ;;  %vm1585_vm7 = vcmp.lt.s32.totalorder %v1130_v4, 15 }
 0x124   :  { %321 = vst [vmem:[#allocation3 + $0x70] sm:$0xf0] %v316_v0  ;;  %110 = vst [vmem:[#allocation3] sm:$0xf0] %v106_v39  ;;  %vm1588_vm10 = vcmask 1043456   ;;  %vm1592_vm9 = vcmask 916480  }
 0x125   :  { %112 = vst [vmem:[#allocation3 + $0x10] sm:$0xf0] %v107_v1  ;;  %213 = vst [vmem:[#allocation3 + $0x40] sm:$0xf] %v205_v8  ;;  %v167_v17 = vsel %vm1588_vm10, %v164_v49, %v165_v11 }
 0x126   :  { %vm1328_vm0 = vmand %vm1585_vm7, %vm1562_vm8  ;;  %v169_v21 = vsel %vm1592_vm9, %v1220_v41, %v167_v17  ;;  %v199_v25 = vpop.permute.xlu1 %198  ;;  %vm1596_vm8 = vcmp.ge.s32.totalorder %v1150_v10, 1 }
 0x127   :  { %vm1589_vm3 = vmmov %vm1588_vm10  ;;  %v174_v26 = vsel %vm1596_vm8, %v169_v21, 0.0  ;;  %vm1597_vm10 = vcmp.ge.s32.totalorder %v1135_v5, 1  ;;  %v359_v21 = vld [vmem:[%s1539_s3] sm:$0xf] }
 0x128   :  { %v170_v18 = vsel %vm1589_vm3, %v165_v11, %v166_v46  ;;  %vm1590_vm1 = vmmov %vm1589_vm3  ;;  %v178_v29 = vcombine.low %v174_v26, %v174_v26  ;;  %183 = vst [vmem:[#allocation3 + $0x28] sm:$0xf0] %v174_v26  ;;  %v374_v55 = vld [vmem:[#allocation3 + $0x68] sm:$0xff]  ;;  %v376_v61 = vld [vmem:[#allocation3 + $0x78] sm:$0xff] }
 0x129   :  { %v340_v19 = vsel %vm1590_vm1, %v337_v7, %v338_v14  ;;  %vm1591_vm13 = vmmov %vm1590_vm1  ;;  %v362_v42 = vld [vmem:[#allocation3 + $0x8] sm:$0xff]  ;;  %vm393_vm1 = vcmask 293888  }
 0x12a   :  { %v343_v20 = vsel %vm1591_vm13, %v338_v14, %v339_v48  ;;  %vm1593_vm2 = vmmov %vm1592_vm9  ;;  %v342_v23 = vsel %vm1594_vm15, %v1222_v43, %v340_v19  ;;  %v201_v43 = vpop.permute.xlu0 %200  ;;  %vm1598_vm9 = vcmask 908288   ;;  %182 = vst [vmem:[#allocation3 + $0x20] sm:$0xf0] %v178_v29  ;;  %v203_v37 = vpop.permute.xlu1 %202  ;;  %v364_v46 = vld [vmem:[#allocation3 + $0x18] sm:$0xff]  ;;  %v373_v62 = vld [vmem:[#allocation3 + $0x60] sm:$0xff] }
 0x12b   :  { %v171_v22 = vsel %vm1593_vm2, %v161_v50, %v170_v18  ;;  %vm1595_vm7 = vmmov %vm1594_vm15  ;;  %v347_v28 = vsel %vm1320_vm6, %v342_v23, 0.0  ;;  %v206_v34 = vsel %vm1598_vm9, %v197_v59, %v199_v25  ;;  %v361_v52 = vld [vmem:[#allocation3] sm:$0xff]  ;;  %v375_v11 = vld [vmem:[#allocation3 + $0x70] sm:$0xff]  ;;  %vm397_vm15 = vcmask 1041408  }
 0x12c   :  { %v344_v24 = vsel %vm1595_vm7, %v334_v2, %v343_v20  ;;  %v175_v27 = vsel %vm1597_vm10, %v171_v22, 0.0  ;;  %v351_v31 = vcombine.high %v347_v28, %v347_v28  ;;  %355 = vst [vmem:[#allocation3 + $0x80] sm:$0xf] %v347_v28  ;;  %vm1599_vm8 = vmmov %vm1598_vm9  ;;  %v363_v54 = vld [vmem:[#allocation3 + $0x10] sm:$0xff]  ;;  %v369_v7 = vld [vmem:[#allocation3 + $0x40] sm:$0xff]  ;;  %v360_v23 = vpack.c.bf16 %v359_v21, %v359_v21 }
 0x12d   :  { %v348_v41 = vsel %vm1328_vm0, %v344_v24, 0.0  ;;  %v179_v30 = vcombine.low %v175_v27, %v175_v27  ;;  %185 = vst [vmem:[#allocation3 + $0x38] sm:$0xf0] %v175_v27  ;;  %v207_v36 = vsel %vm1599_vm8, %v199_v25, %v201_v43  ;;  %214 = vst [vmem:[#allocation3 + $0x48] sm:$0xf] %v206_v34  ;;  %v385_v14 = vpack.c.bf16 %v373_v62, %v369_v7 }
 0x12e   :  { %v352_v33 = vcombine.high %v348_v41, %v348_v41  ;;  %357 = vst [vmem:[#allocation3 + $0x90] sm:$0xf] %v348_v41  ;;  %356 = vst [vmem:[#allocation3 + $0x88] sm:$0xf] %v351_v31 }
 0x12f   :  { %184 = vst [vmem:[#allocation3 + $0x30] sm:$0xf0] %v179_v30  ;;  %215 = vst [vmem:[#allocation3 + $0x50] sm:$0xf] %v207_v36  ;;  %v366_v44 = vld [vmem:[#allocation3 + $0x28] sm:$0xff] }
 0x130   :  { %358 = vst [vmem:[#allocation3 + $0x98] sm:$0xf] %v352_v33  ;;  %vm1600_vm13 = vmmov %vm1599_vm8  ;;  %v382_v49 = vpack.c.bf16 %v366_v44, %v362_v42 }
 0x131   :  { %v208_v38 = vsel %vm1600_vm13, %v201_v43, %v203_v37  ;;  %v365_v56 = vld [vmem:[#allocation3 + $0x20] sm:$0xff]  ;;  %vm1601_vm2 = vmmov %vm1589_vm3 }
 0x132   :  { %216 = vst [vmem:[#allocation3 + $0x58] sm:$0xf] %v208_v38  ;;  %410 = vmatprep.subr.bf16.mxu0 %v382_v49  ;;  %v381_v57 = vpack.c.bf16 %v365_v56, %v361_v52  ;;  %vm1602_vm3 = vmmov %vm1601_vm2 }
 0x133   :  { %v377_v39 = vld [vmem:[#allocation3 + $0x80] sm:$0xf]  ;;  %vm1603_vm7 = vmmov %vm1601_vm2 }
 0x134   :  { %v368_v48 = vld [vmem:[#allocation3 + $0x38] sm:$0xff]  ;;  %v370_v40 = vld [vmem:[#allocation3 + $0x48] sm:$0xff]  ;;  %411 = vmatpush1.bf16.msra.mxu0 %v381_v57  ;;  %v389_v18 = vpack.c.bf16 %v377_v39, %v377_v39  ;;  %vm1604_vm10 = vmmov %vm1601_vm2 }
 0x135   :  { %v384_v50 = vpack.c.bf16 %v368_v48, %v364_v46  ;;  %v386_v59 = vpack.c.bf16 %v374_v55, %v370_v40  ;;  %v378_v60 = vld [vmem:[#allocation3 + $0x88] sm:$0xf]  ;;  %v379_v2 = vld [vmem:[#allocation3 + $0x90] sm:$0xf]  ;;  %vm1605_vm9 = vmmov %vm1601_vm2 }
 0x136   :  { %v367_v35 = vld [vmem:[#allocation3 + $0x30] sm:$0xff]  ;;  %v390_v8 = vpack.c.bf16 %v378_v60, %v378_v60  ;;  %v391_v20 = vpack.c.bf16 %v379_v2, %v379_v2  ;;  %v399_v22 = vsel %vm397_vm15, %v389_v18, 0  ;;  %vm1606_vm8 = vmmov %vm1601_vm2 }
 0x137   :  { %451 = vmatprep.subr.bf16.mxu1 %v384_v50  ;;  %v383_v58 = vpack.c.bf16 %v367_v35, %v363_v54  ;;  %v371_v63 = vld [vmem:[#allocation3 + $0x50] sm:$0xff]  ;;  %v380_v1 = vld [vmem:[#allocation3 + $0x98] sm:$0xf]  ;;  %412 = vmatprep.subr.bf16.mxu0 %v386_v59  ;;  %vm1607_vm13 = vmmov %vm1601_vm2 }
 0x138   :  { %v387_v17 = vpack.c.bf16 %v375_v11, %v371_v63  ;;  %v392_v19 = vpack.c.bf16 %v380_v1, %v380_v1  ;;  %413 = vmatpush1.bf16.msra.mxu0 %v385_v14  ;;  %v405_v24 = vsel %vm397_vm15, %v391_v20, 0 }
 0x139   :  { %v372_v47 = vld [vmem:[#allocation3 + $0x58] sm:$0xff]  ;;  %452 = vmatpush1.bf16.msra.mxu1 %v383_v58  ;;  %1038 = vmatprep.subr.msk.bf16.mxu0 %vm397_vm15, %v390_v8 }
 0x13a   :  { %v388_v0 = vpack.c.bf16 %v376_v61, %v372_v47 }
 0x13c   :  { %453 = vmatprep.subr.bf16.mxu1 %v388_v0  ;;  %415 = vmatpush1.bf16.msra.mxu0 %v399_v22 }
 0x13d   :  { %454 = vmatpush1.bf16.msra.mxu1 %v387_v17 }
 0x13e   :  { %1040 = vmatprep.subr.msk.bf16.mxu1 %vm397_vm15, %v392_v19 }
 0x13f   :  { %1039 = vmatmul.mubr.msk.bf16.vlgmr.msra.gmra.mrb[0].mxu0 %vm393_vm1, %v360_v23 }
 0x140   :  { %918 = vmatprep.mubr.bf16.mxu0 %v1078_v32 }
 0x141   :  { %456 = vmatpush1.bf16.msra.mxu1 %v405_v24 }
 0x144   :  { %1041 = vmatmul.mubr.msk.bf16.vlgmr.msra.gmra.mrb[0].mxu1 %vm393_vm1, %v360_v23 }
 0x145   :  { %959 = vmatprep.mubr.bf16.mxu1 %v1078_v32  ;;  %v527_v32 = vld [vmem:[%s1540_s4] sm:$0xf] }
 0x212   :  { %v444_v25 = vpop.f32.mrb[0].mxu0 }
 0x213   :  { %v492_v27 = vsel %vm1601_vm2, %v444_v25, 0.0  ;;  %v446_v28 = vpop.f32.mrb[1].mxu0 }
 0x214   :  { %v493_v29 = vsel %vm1602_vm3, %v446_v28, 0.0  ;;  %v448_v30 = vpop.f32.mrb[2].mxu0  ;;  %vm1608_vm3 = vcmask 138240  }
 0x215   :  { %v494_v33 = vadd.f32 %v493_v29, %v492_v27  ;;  %v449_v34 = vpop.f32.mrb[3].mxu0 }
 0x217   :  { %v485_v26 = vpop.f32.mrb[0].mxu1 }
 0x218   :  { %v487_v41 = vpop.f32.mrb[1].mxu1  ;;  %v495_v43 = vsel %vm1603_vm7, %v485_v26, 0.0  ;;  %vm1609_vm7 = vmmov %vm1601_vm2 }
 0x219   :  { %v489_v31 = vpop.f32.mrb[2].mxu1  ;;  %v497_v37 = vsel %vm1604_vm10, %v487_v41, 0.0  ;;  %v496_v38 = vadd.f32 %v495_v43, %v494_v33  ;;  %vm1610_vm10 = vcmask 134144  }
 0x21a   :  { %v490_v36 = vpop.f32.mrb[3].mxu1 }
 0x21b   :  { %v498_v42 = vadd.f32 %v497_v37, %v496_v38 }
 0x21d   :  { %499 = vadd.xlane.f32.xlu0 %v498_v42 }
 0x233   :  { %530 = vperm.xlu0 %1057, %v527_v32  }
 0x2aa   :  { %v500_v44 = vpop.xlane.xlu0 %499 }
 0x2ab   :  { %v502_v46 = vmul.f32 0.001953125, %v500_v44 }
 0x2ad   :  { %v503_v48 = vsub.f32 %v444_v25, %v502_v46  ;;  %v504_v49 = vsub.f32 %v446_v28, %v502_v46  ;;  %v505_v50 = vsub.f32 %v485_v26, %v502_v46  ;;  %v506_v52 = vsub.f32 %v487_v41, %v502_v46 }
 0x2af   :  { %v507_v54 = vmul.f32 %v503_v48, %v503_v48  ;;  %v508_v55 = vmul.f32 %v504_v49, %v504_v49  ;;  %v509_v56 = vmul.f32 %v505_v50, %v505_v50  ;;  %v510_v35 = vmul.f32 %v506_v52, %v506_v52 }
 0x2b1   :  { %v511_v40 = vsel %vm1605_vm9, %v507_v54, 0.0  ;;  %v512_v57 = vsel %vm1606_vm8, %v508_v55, 0.0  ;;  %v514_v59 = vsel %vm1607_vm13, %v509_v56, 0.0  ;;  %v516_v61 = vsel %vm1601_vm2, %v510_v35, 0.0  ;;  %vm1611_vm9 = vmmov %vm1608_vm3 }
 0x2b2   :  { %v513_v58 = vadd.f32 %v512_v57, %v511_v40  ;;  %v531_v1 = vpop.permute.xlu0 %530  ;;  %vm1616_vm13 = vcmp.ge.s32.totalorder %v1150_v10, 1 }
 0x2b4   :  { %v515_v60 = vadd.f32 %v514_v59, %v513_v58 }
 0x2b6   :  { %v517_v62 = vadd.f32 %v516_v61, %v515_v60 }
 0x2b8   :  { %518 = vadd.xlane.f32.xlu1 %v517_v62 }
 0x345   :  { %v519_v47 = vpop.xlane.xlu1 %518 }
 0x346   :  { %v520_v63 = vmul.f32 0.001953125, %v519_v47 }
 0x348   :  { %v521_v0 = vadd.f32 1e-05, %v520_v63 }
 0x34a   :  { %1062 = vrsqrt.f32 %v521_v0 }
 0x354   :  { %v1063_v39 = vpop.eup %1062 }
 0x355   :  { %v523_v2 = vmul.f32 %v1063_v39, %v503_v48  ;;  %v524_v7 = vmul.f32 %v1063_v39, %v504_v49  ;;  %v525_v8 = vmul.f32 %v1063_v39, %v505_v50  ;;  %v526_v11 = vmul.f32 %v1063_v39, %v506_v52 }
 0x357   :  { %v533_v14 = vadd.f32 %v531_v1, %v523_v2  ;;  %v534_v17 = vadd.f32 %v531_v1, %v524_v7  ;;  %v535_v18 = vadd.f32 %v531_v1, %v525_v8  ;;  %v536_v19 = vadd.f32 %v531_v1, %v526_v11 }
 0x359   :  { %v537_v20 = vmax.f32 %v533_v14, 0.0  ;;  %v538_v21 = vmax.f32 %v534_v17, 0.0  ;;  %v539_v23 = vmax.f32 %v535_v18, 0.0  ;;  %v540_v24 = vmax.f32 %v536_v19, 0.0 }
 0x35b   :  { %v545_v22 = vcombine.low %v537_v20, %v538_v21  ;;  %v546_v25 = vcombine.low %v539_v23, %v540_v24 }
 0x35d   :  { %547 = vrot.lane.b32.xlu1 %v545_v22, %s1069_s26 }
 0x361   :  { %549 = vrot.lane.b32.xlu1 %v546_v25, %s1069_s26 }
 0x3cf   :  { %v548_v26 = vpop.permute.xlu1 %547 }
 0x3d0   :  { %v551_v27 = vrot.slane %v548_v26, 4 }
 0x3d2   :  { %v553_v28 = vsel %vm1608_vm3, %v551_v27, %v548_v26 }
 0x3d3   :  { %559 = vst.msk [vmem:[#allocation2] sm:$0xff] %vm1137_vm4, %v553_v28  ;;  %v550_v41 = vpop.permute.xlu1 %549  ;;  %vm1612_vm4 = vmmov %vm1601_vm2 }
 0x3d4   :  { %v552_v29 = vrot.slane %v550_v41, 4  ;;  %vm1618_vm3 = vmmov %vm1612_vm4 }
 0x3d6   :  { %v554_v30 = vsel %vm1609_vm7, %v551_v27, %v552_v29  ;;  %561 = vst.msk [vmem:[#allocation2 + $0x10] sm:$0xf] %vm1610_vm10, %v552_v29  ;;  %vm1619_vm7 = vmmov %vm1618_vm3 }
 0x3d7   :  { %v555_v43 = vsel %vm1611_vm9, %v554_v30, %v550_v41  ;;  %vm1620_vm10 = vmmov %vm1618_vm3 }
 0x3d8   :  { %v565_v31 = vsel %vm1162_vm11, %v555_v43, 0.0  ;;  %v682_v49 = vcombine.high %v555_v43, %v555_v43  ;;  %vm1613_vm11 = vmmov %vm1601_vm2  ;;  %vm1617_vm2 = vcmp.ge.s32.totalorder %v1135_v5, 1 }
 0x3d9   :  { %v569_v33 = vcombine.high %v565_v31, %v565_v31  ;;  %574 = vst [vmem:[#allocation3 + $0x10] sm:$0xf] %v565_v31  ;;  %vm1621_vm9 = vmmov %vm1618_vm3 }
 0x3da   :  { %v609_v34 = vld [vmem:[#allocation2] sm:$0xff] }
 0x3db   :  { %v564_v36 = vsel %vm1173_vm12, %v609_v34, 0.0  ;;  %575 = vst [vmem:[#allocation3 + $0x18] sm:$0xf] %v569_v33  ;;  %v681_v48 = vcombine.high %v609_v34, %v609_v34  ;;  %vm1614_vm12 = vcmask 916480  }
 0x3dc   :  { %v568_v6 = vcombine.high %v564_v36, %v564_v36  ;;  %572 = vst [vmem:[#allocation3] sm:$0xf] %v564_v36  ;;  %vm1615_vm8 = vmmov %vm1614_vm12 }
 0x3dd   :  { %v611_v37 = vld [vmem:[#allocation2 + $0x10] sm:$0xf] }
 0x3de   :  { %v578_v38 = vld [vmem:[#allocation2 + $0x10] sm:$0xf]  ;;  %619 = vrot.lane.b32.xlu1 %v611_v37, %s1070_s1  ;;  %573 = vst [vmem:[#allocation3 + $0x8] sm:$0xf] %v568_v6 }
 0x3df   :  { %586 = vrot.lane.b32.xlu0 %v578_v38, %s1071_s2  ;;  %v644_v42 = vld [vmem:[#allocation2 + $0x10] sm:$0xf] }
 0x3e0   :  { %v740_v32 = vld [vmem:[#allocation2 + $0x10] sm:$0xf] }
 0x3e1   :  { %v707_v13 = vld [vmem:[#allocation2 + $0x10] sm:$0xf] }
 0x3e2   :  { %652 = vrot.lane.b32.xlu1 %v644_v42, %s1072_s14  ;;  %v773_v44 = vld [vmem:[#allocation2 + $0x10] sm:$0xf] }
 0x3e3   :  { %748 = vrot.lane.b32.xlu0 %v740_v32, %s1073_s15  ;;  %v806_v16 = vld [vmem:[#allocation2 + $0x10] sm:$0xf] }
 0x3e4   :  { %v677_v46 = vld [vmem:[#allocation2 + $0x10] sm:$0xf] }
 0x3e6   :  { %715 = vrot.lane.b32.xlu1 %v707_v13, %s1074_s16 }
 0x3e7   :  { %781 = vrot.lane.b32.xlu0 %v773_v44, %s1075_s17 }
 0x3ea   :  { %615 = vrot.lane.b32.xlu1 %v609_v34, %s1070_s1 }
 0x3eb   :  { %814 = vrot.lane.b32.xlu0 %v806_v16, %s1076_s18 }
 0x3ee   :  { %582 = vrot.lane.b32.xlu1 %v609_v34, %s1071_s2 }
 0x3ef   :  { %744 = vrot.lane.b32.xlu0 %v609_v34, %s1073_s15 }
 0x3f2   :  { %648 = vrot.lane.b32.xlu1 %v609_v34, %s1072_s14 }
 0x3f3   :  { %711 = vrot.lane.b32.xlu0 %v609_v34, %s1074_s16 }
 0x3f6   :  { %810 = vrot.lane.b32.xlu1 %v609_v34, %s1076_s18 }
 0x3f7   :  { %777 = vrot.lane.b32.xlu0 %v609_v34, %s1075_s17 }
 0x3fa   :  { %683 = vrot.lane.b32.xlu1 %v609_v34, %s1077_s19 }
 0x3fb   :  { %650 = vrot.lane.b32.xlu0 %v555_v43, %s1072_s14 }
 0x3fe   :  { %617 = vrot.lane.b32.xlu1 %v555_v43, %s1070_s1 }
 0x3ff   :  { %812 = vrot.lane.b32.xlu0 %v555_v43, %s1076_s18 }
 0x402   :  { %584 = vrot.lane.b32.xlu1 %v555_v43, %s1071_s2 }
 0x403   :  { %687 = vrot.lane.b32.xlu0 %v555_v43, %s1077_s19 }
 0x406   :  { %746 = vrot.lane.b32.xlu1 %v555_v43, %s1073_s15 }
 0x407   :  { %691 = vrot.lane.b32.xlu0 %v677_v46, %s1077_s19 }
 0x40a   :  { %713 = vrot.lane.b32.xlu1 %v555_v43, %s1074_s16 }
 0x40e   :  { %779 = vrot.lane.b32.xlu1 %v555_v43, %s1075_s17 }
 0x412   :  { %685 = vrot.lane.b32.xlu1 %v681_v48, %s1077_s19 }
 0x416   :  { %689 = vrot.lane.b32.xlu1 %v682_v49, %s1077_s19 }
 0x450   :  { %v620_v50 = vpop.permute.xlu1 %619 }
 0x451   :  { %v1413_v52 = vpop.permute.xlu0 %586  ;;  %v623_v7 = vrot.slane %v620_v50, 4 }
 0x452   :  { %v590_v12 = vrot.slane %v1413_v52, 4 }
 0x454   :  { %v653_v54 = vpop.permute.xlu1 %652 }
 0x455   :  { %v1415_v55 = vpop.permute.xlu0 %748  ;;  %v656_v39 = vrot.slane %v653_v54, 4 }
 0x456   :  { %v752_v49 = vrot.slane %v1415_v55, 4 }
 0x458   :  { %v1417_v56 = vpop.permute.xlu1 %715 }
 0x459   :  { %v1419_v35 = vpop.permute.xlu0 %781 }
 0x45c   :  { %v616_v40 = vpop.permute.xlu1 %615 }
 0x45d   :  { %v815_v57 = vpop.permute.xlu0 %814  ;;  %v621_v8 = vrot.slane %v616_v40, 4 }
 0x45e   :  { %v818_v17 = vrot.slane %v815_v57, 4  ;;  %v719_v57 = vrot.slane %v1417_v56, 4 }
 0x460   :  { %v1421_v58 = vpop.permute.xlu1 %582 }
 0x461   :  { %v1423_v59 = vpop.permute.xlu0 %744  ;;  %v588_v48 = vrot.slane %v1421_v58, 4 }
 0x462   :  { %v750_v15 = vrot.slane %v1423_v59, 4 }
 0x464   :  { %v649_v60 = vpop.permute.xlu1 %648 }
 0x465   :  { %v1425_v61 = vpop.permute.xlu0 %711  ;;  %v654_v1 = vrot.slane %v649_v60, 4 }
 0x468   :  { %v811_v62 = vpop.permute.xlu1 %810 }
 0x469   :  { %v1427_v47 = vpop.permute.xlu0 %777  ;;  %v816_v18 = vrot.slane %v811_v62, 4 }
 0x46c   :  { %v1429_v63 = vpop.permute.xlu1 %683 }
 0x46d   :  { %v651_v0 = vpop.permute.xlu0 %650 }
 0x46e   :  { %v655_v2 = vrot.slane %v651_v0, 4 }
 0x470   :  { %v657_v11 = vsel %vm1612_vm4, %v654_v1, %v655_v2  ;;  %v659_v14 = vsel %vm1613_vm11, %v655_v2, %v656_v39  ;;  %v618_v22 = vpop.permute.xlu1 %617  ;;  %vm1622_vm4 = vcmask 769024  }
 0x471   :  { %v658_v19 = vsel %vm1614_vm12, %v649_v60, %v657_v11  ;;  %v660_v20 = vsel %vm1615_vm8, %v651_v0, %v659_v14  ;;  %v813_v21 = vpop.permute.xlu0 %812  ;;  %v622_v26 = vrot.slane %v618_v22, 4  ;;  %vm1623_vm11 = vmmov %vm1622_vm4  ;;  %vm1624_vm12 = vcmask 1031168  }
 0x472   :  { %v663_v23 = vsel %vm1616_vm13, %v658_v19, 0.0  ;;  %v664_v24 = vsel %vm1617_vm2, %v660_v20, 0.0  ;;  %v817_v25 = vrot.slane %v813_v21, 4  ;;  %vm1625_vm8 = vmmov %vm1624_vm12  ;;  %vm1630_vm13 = vcmp.ge.s32.totalorder %v1145_v9, 1 }
 0x473   :  { %v667_v27 = vcombine.low %v663_v23, %v663_v23  ;;  %v668_v28 = vcombine.low %v664_v24, %v664_v24  ;;  %672 = vst [vmem:[#allocation3 + $0x28] sm:$0xf0] %v663_v23  ;;  %674 = vst [vmem:[#allocation3 + $0x38] sm:$0xf0] %v664_v24  ;;  %v624_v30 = vsel %vm1620_vm10, %v621_v8, %v622_v26  ;;  %vm1631_vm2 = vcmp.ge.s32.totalorder %v1130_v4, 1 }
 0x474   :  { %v819_v41 = vsel %vm1618_vm3, %v816_v18, %v817_v25  ;;  %v821_v29 = vsel %vm1619_vm7, %v817_v25, %v818_v17  ;;  %v626_v43 = vsel %vm1621_vm9, %v622_v26, %v623_v7  ;;  %v625_v34 = vsel %vm1624_vm12, %v616_v40, %v624_v30  ;;  %v585_v6 = vpop.permute.xlu1 %584  ;;  %vm1632_vm7 = vmmov %vm1618_vm3 }
 0x475   :  { %671 = vst [vmem:[#allocation3 + $0x20] sm:$0xf0] %v667_v27  ;;  %673 = vst [vmem:[#allocation3 + $0x30] sm:$0xf0] %v668_v28  ;;  %v820_v31 = vsel %vm1622_vm4, %v811_v62, %v819_v41  ;;  %v822_v33 = vsel %vm1623_vm11, %v813_v21, %v821_v29  ;;  %v627_v36 = vsel %vm1625_vm8, %v618_v22, %v626_v43  ;;  %v630_v42 = vsel %vm1260_vm5, %v625_v34, 0.0  ;;  %v688_v27 = vpop.permute.xlu0 %687 }
 0x476   :  { %v825_v37 = vsel %vm1320_vm6, %v820_v31, 0.0  ;;  %v826_v38 = vsel %vm1328_vm0, %v822_v33, 0.0  ;;  %v631_v32 = vsel %vm1270_vm14, %v627_v36, 0.0  ;;  %v634_v16 = vcombine.high %v630_v42, %v630_v42  ;;  %638 = vst [vmem:[#allocation3 + $0x20] sm:$0xf] %v630_v42  ;;  %vm1626_vm5 = vmmov %vm1618_vm3 }
 0x477   :  { %v829_v13 = vcombine.high %v825_v37, %v825_v37  ;;  %v830_v44 = vcombine.high %v826_v38, %v826_v38  ;;  %833 = vst [vmem:[#allocation3 + $0x80] sm:$0xf] %v825_v37  ;;  %835 = vst [vmem:[#allocation3 + $0x90] sm:$0xf] %v826_v38  ;;  %v635_v46 = vcombine.high %v631_v32, %v631_v32  ;;  %v589_v45 = vrot.slane %v585_v6, 4 }
 0x478   :  { %640 = vst [vmem:[#allocation3 + $0x30] sm:$0xf] %v631_v32  ;;  %639 = vst [vmem:[#allocation3 + $0x28] sm:$0xf] %v634_v16  ;;  %v747_v3 = vpop.permute.xlu1 %746  ;;  %vm1628_vm6 = vcmask 1039360   ;;  %vm1633_vm10 = vcmask 785408   ;;  %vm1635_vm4 = vnez %v1570_v51  ;;  %vm1636_vm11 = vnez %v1572_v53 }
 0x479   :  { %834 = vst [vmem:[#allocation3 + $0x88] sm:$0xf] %v829_v13  ;;  %836 = vst [vmem:[#allocation3 + $0x98] sm:$0xf] %v830_v44  ;;  %v591_v50 = vsel %vm1626_vm5, %v588_v48, %v589_v45  ;;  %v751_v40 = vrot.slane %v747_v3, 4  ;;  %v717_v8 = vrot.slane %v1425_v61, 4 }
 0x47a   :  { %641 = vst [vmem:[#allocation3 + $0x38] sm:$0xf] %v635_v46  ;;  %vm1627_vm14 = vmmov %vm1618_vm3  ;;  %v592_v52 = vsel %vm1628_vm6, %v1421_v58, %v591_v50  ;;  %v785_v21 = vrot.slane %v1419_v35, 4  ;;  %vm1639_vm5 = vcmask 900096   ;;  %v783_v23 = vrot.slane %v1427_v47, 4 }
 0x47b   :  { %v593_v54 = vsel %vm1627_vm14, %v589_v45, %v590_v12  ;;  %vm1629_vm0 = vmmov %vm1628_vm6  ;;  %v597_v55 = vsel %vm1630_vm13, %v592_v52, 0.0  ;;  %v753_v0 = vsel %vm1618_vm3, %v750_v15, %v751_v40  ;;  %v755_v39 = vsel %vm1632_vm7, %v751_v40, %v752_v49  ;;  %v692_v12 = vpop.permute.xlu0 %691 }
 0x47c   :  { %v594_v60 = vsel %vm1629_vm0, %v585_v6, %v593_v54  ;;  %v601_v1 = vcombine.low %v597_v55, %v597_v55  ;;  %606 = vst [vmem:[#allocation3 + $0x8] sm:$0xf0] %v597_v55  ;;  %v754_v56 = vsel %vm1633_vm10, %v1423_v59, %v753_v0  ;;  %vm1634_vm9 = vmmov %vm1633_vm10  ;;  %v714_v7 = vpop.permute.xlu1 %713  ;;  %vm1641_vm6 = vcmp.lt.s32.totalorder %v1150_v10, 15 }
 0x47d   :  { %v598_v62 = vsel %vm1631_vm2, %v594_v60, 0.0  ;;  %v756_v58 = vsel %vm1634_vm9, %v747_v3, %v755_v39  ;;  %v759_v11 = vsel %vm1635_vm4, %v754_v56, 0.0  ;;  %v718_v17 = vrot.slane %v714_v7, 4  ;;  %vm1637_vm12 = vmmov %vm1618_vm3  ;;  %v843_v13 = vld [vmem:[#allocation3 + $0x20] sm:$0xff] }
 0x47e   :  { %v602_v2 = vcombine.low %v598_v62, %v598_v62  ;;  %608 = vst [vmem:[#allocation3 + $0x18] sm:$0xf0] %v598_v62  ;;  %v760_v14 = vsel %vm1636_vm11, %v756_v58, 0.0  ;;  %605 = vst [vmem:[#allocation3] sm:$0xf0] %v601_v1  ;;  %v763_v18 = vcombine.high %v759_v11, %v759_v11  ;;  %vm1642_vm0 = vcmp.lt.s32.totalorder %v1135_v5, 15 }
 0x47f   :  { %v764_v19 = vcombine.high %v760_v14, %v760_v14  ;;  %767 = vst [vmem:[#allocation3 + $0x60] sm:$0xf] %v759_v11  ;;  %769 = vst [vmem:[#allocation3 + $0x70] sm:$0xf] %v760_v14  ;;  %v720_v59 = vsel %vm1637_vm12, %v717_v8, %v718_v17  ;;  %v844_v41 = vld [vmem:[#allocation3 + $0x28] sm:$0xff]  ;;  %vm1647_vm10 = vcmp.lt.s32.totalorder %v1145_v9, 15 }
 0x480   :  { %607 = vst [vmem:[#allocation3 + $0x10] sm:$0xf0] %v602_v2  ;;  %vm1638_vm8 = vmmov %vm1618_vm3  ;;  %v721_v51 = vsel %vm1639_vm5, %v1425_v61, %v720_v59  ;;  %v780_v22 = vpop.permute.xlu1 %779  ;;  %vm1648_vm9 = vcmp.lt.s32.totalorder %v1130_v4, 15  ;;  %vm1649_vm4 = vcmask 908288   ;;  %v845_v46 = vld [vmem:[#allocation3 + $0x30] sm:$0xff] }
 0x481   :  { %v722_v20 = vsel %vm1638_vm8, %v718_v17, %v719_v57  ;;  %768 = vst [vmem:[#allocation3 + $0x68] sm:$0xf] %v763_v18  ;;  %770 = vst [vmem:[#allocation3 + $0x78] sm:$0xf] %v764_v19  ;;  %v726_v24 = vsel %vm1641_vm6, %v721_v51, 0.0  ;;  %v784_v26 = vrot.slane %v780_v22, 4 }
 0x482   :  { %vm1640_vm14 = vmmov %vm1639_vm5  ;;  %v730_v28 = vcombine.low %v726_v24, %v726_v24  ;;  %735 = vst [vmem:[#allocation3 + $0x48] sm:$0xf0] %v726_v24  ;;  %v846_v31 = vld [vmem:[#allocation3 + $0x38] sm:$0xff]  ;;  %v856_v50 = vld [vmem:[#allocation3 + $0x88] sm:$0xf] }
 0x483   :  { %v723_v53 = vsel %vm1640_vm14, %v714_v7, %v722_v20  ;;  %vm1643_vm13 = vmmov %vm1618_vm3  ;;  %v840_v30 = vld [vmem:[#allocation3 + $0x8] sm:$0xff]  ;;  %v855_v54 = vld [vmem:[#allocation3 + $0x80] sm:$0xf]  ;;  %v868_v0 = vpack.c.bf16 %v856_v50, %v856_v50 }
 0x484   :  { %v727_v25 = vsel %vm1642_vm0, %v723_v53, 0.0  ;;  %v786_v61 = vsel %vm1643_vm13, %v783_v23, %v784_v26  ;;  %vm1644_vm2 = vmmov %vm1618_vm3  ;;  %734 = vst [vmem:[#allocation3 + $0x40] sm:$0xf0] %v730_v28  ;;  %vm1645_vm3 = vcmask 777216   ;;  %v860_v33 = vpack.c.bf16 %v844_v41, %v840_v30  ;;  %v686_v34 = vpop.permute.xlu1 %685  ;;  %v858_v55 = vld [vmem:[#allocation3 + $0x98] sm:$0xf] }
 0x485   :  { %v731_v35 = vcombine.low %v727_v25, %v727_v25  ;;  %737 = vst [vmem:[#allocation3 + $0x58] sm:$0xf0] %v727_v25  ;;  %v788_v29 = vsel %vm1644_vm2, %v784_v26, %v785_v21  ;;  %v842_v43 = vld [vmem:[#allocation3 + $0x18] sm:$0xff]  ;;  %v787_v5 = vsel %vm1645_vm3, %v1427_v47, %v786_v61  ;;  %vm1646_vm7 = vmmov %vm1645_vm3  ;;  %v693_v38 = vsel %vm1649_vm4, %v1429_v63, %v686_v34  ;;  %v839_v32 = vld [vmem:[#allocation3] sm:$0xff] }
 0x486   :  { %v789_v10 = vsel %vm1646_vm7, %v780_v22, %v788_v29  ;;  %v862_v36 = vpack.c.bf16 %v846_v31, %v842_v43  ;;  %v792_v6 = vsel %vm1647_vm10, %v787_v5, 0.0  ;;  %vm1650_vm11 = vmmov %vm1649_vm4  ;;  %886 = vmatprep.subr.bf16.mxu0 %v860_v33  ;;  %701 = vst [vmem:[#allocation3 + $0x40] sm:$0xf] %v693_v38  ;;  %v859_v9 = vpack.c.bf16 %v843_v13, %v839_v32  ;;  %v857_v62 = vld [vmem:[#allocation3 + $0x90] sm:$0xf] }
 0x487   :  { %736 = vst [vmem:[#allocation3 + $0x50] sm:$0xf0] %v731_v35  ;;  %v793_v37 = vsel %vm1648_vm9, %v789_v10, 0.0  ;;  %v694_v42 = vsel %vm1650_vm11, %v686_v34, %v688_v27  ;;  %v841_v44 = vld [vmem:[#allocation3 + $0x10] sm:$0xff]  ;;  %v796_v47 = vcombine.low %v792_v6, %v792_v6  ;;  %801 = vst [vmem:[#allocation3 + $0x68] sm:$0xf0] %v792_v6  ;;  %v867_v56 = vpack.c.bf16 %v855_v54, %v855_v54 }
 0x488   :  { %v797_v16 = vcombine.low %v793_v37, %v793_v37  ;;  %803 = vst [vmem:[#allocation3 + $0x78] sm:$0xf0] %v793_v37  ;;  %702 = vst [vmem:[#allocation3 + $0x48] sm:$0xf] %v694_v42  ;;  %927 = vmatprep.subr.bf16.mxu1 %v862_v36  ;;  %v861_v4 = vpack.c.bf16 %v845_v46, %v841_v44  ;;  %887 = vmatpush1.bf16.msra.mxu0 %v859_v9  ;;  %v690_v63 = vpop.permute.xlu1 %689  ;;  %v837_v8 = vld [vmem:[%s1541_s5] sm:$0xf] }
 0x489   :  { %800 = vst [vmem:[#allocation3 + $0x60] sm:$0xf0] %v796_v47  ;;  %vm1651_vm12 = vmmov %vm1649_vm4  ;;  %v870_v11 = vpack.c.bf16 %v858_v55, %v858_v55  ;;  %v869_v14 = vpack.c.bf16 %v857_v62, %v857_v62  ;;  %v875_v17 = vsel %vm397_vm15, %v867_v56, 0  ;;  %v838_v18 = vpack.c.bf16 %v837_v8, %v837_v8 }
 0x48a   :  { %802 = vst [vmem:[#allocation3 + $0x70] sm:$0xf0] %v797_v16  ;;  %928 = vmatpush1.bf16.msra.mxu1 %v861_v4  ;;  %v695_v48 = vsel %vm1651_vm12, %v688_v27, %v690_v63  ;;  %vm1652_vm8 = vmmov %vm1649_vm4  ;;  %v1002_v16 = vld [vmem:[%s1542_s6] sm:$0xf] }
 0x48b   :  { %v696_v45 = vsel %vm1652_vm8, %v690_v63, %v692_v12  ;;  %703 = vst [vmem:[#allocation3 + $0x50] sm:$0xf] %v695_v48  ;;  %v881_v19 = vsel %vm397_vm15, %v869_v14, 0  ;;  %vm1653_vm5 = vmmov %vm1644_vm2  ;;  %v1066_v63 = vld [vmem:[%s1536_s0] sm:$0xff] }
 0x48c   :  { %704 = vst [vmem:[#allocation3 + $0x58] sm:$0xf] %v696_v45  ;;  %vm1654_vm14 = vmmov %vm1644_vm2  ;;  %v1012_v48 = vcombine.high %v1066_v63, %v1066_v63  ;;  %v1067_v45 = vld [vmem:[%s1536_s0 + $0x8] sm:$0xff] }
 0x48d   :  { %v847_v40 = vld [vmem:[#allocation3 + $0x40] sm:$0xff]  ;;  %vm1655_vm6 = vmmov %vm1644_vm2 }
 0x48e   :  { %v852_v3 = vld [vmem:[#allocation3 + $0x68] sm:$0xff] }
 0x48f   :  { %v848_v49 = vld [vmem:[#allocation3 + $0x48] sm:$0xff]  ;;  %v854_v60 = vld [vmem:[#allocation3 + $0x78] sm:$0xff] }
 0x490   :  { %v864_v15 = vpack.c.bf16 %v852_v3, %v848_v49  ;;  %v851_v57 = vld [vmem:[#allocation3 + $0x60] sm:$0xff]  ;;  %v1013_v49 = vcombine.high %v1067_v45, %v1067_v45 }
 0x491   :  { %v863_v52 = vpack.c.bf16 %v851_v57, %v847_v40  ;;  %v853_v2 = vld [vmem:[#allocation3 + $0x70] sm:$0xff] }
 0x492   :  { %888 = vmatprep.subr.bf16.mxu0 %v864_v15  ;;  %v849_v1 = vld [vmem:[#allocation3 + $0x50] sm:$0xff] }
 0x493   :  { %v850_v39 = vld [vmem:[#allocation3 + $0x58] sm:$0xff]  ;;  %889 = vmatpush1.bf16.msra.mxu0 %v863_v52  ;;  %v865_v7 = vpack.c.bf16 %v853_v2, %v849_v1 }
 0x494   :  { %v866_v58 = vpack.c.bf16 %v854_v60, %v850_v39  ;;  %1042 = vmatprep.subr.msk.bf16.mxu0 %vm397_vm15, %v868_v0 }
 0x496   :  { %929 = vmatprep.subr.bf16.mxu1 %v866_v58 }
 0x497   :  { %930 = vmatpush1.bf16.msra.mxu1 %v865_v7  ;;  %891 = vmatpush1.bf16.msra.mxu0 %v875_v17 }
 0x498   :  { %1044 = vmatprep.subr.msk.bf16.mxu1 %vm397_vm15, %v870_v11  ;;  %vm1656_vm15 = vmmov %vm1644_vm2 }
 0x49a   :  { %1043 = vmatmul.mubr.msk.bf16.vlgmr.msra.gmra.mrb[4].mxu0 %vm393_vm1, %v838_v18 }
 0x49b   :  { %932 = vmatpush1.bf16.msra.mxu1 %v881_v19 }
 0x49e   :  { %1045 = vmatmul.mubr.msk.bf16.vlgmr.msra.gmra.mrb[4].mxu1 %vm393_vm1, %v838_v18  ;;  %vm1657_vm1 = vmmov %vm1644_vm2 }
 0x49f   :  { %vm1658_vm0 = vmmov %vm1657_vm1 }
 0x4a0   :  { %vm1659_vm13 = vmmov %vm1658_vm0 }
 0x4a1   :  { %vm1660_vm2 = vmmov %vm1658_vm0 }
 0x56d   :  { %v920_v59 = vpop.f32.mrb[4].mxu0 }
 0x56e   :  { %v968_v20 = vsel %vm1653_vm5, %v920_v59, 0.0  ;;  %v922_v21 = vpop.f32.mrb[5].mxu0 }
 0x56f   :  { %v969_v51 = vsel %vm1654_vm14, %v922_v21, 0.0  ;;  %v924_v53 = vpop.f32.mrb[6].mxu0 }
 0x570   :  { %v970_v22 = vadd.f32 %v969_v51, %v968_v20  ;;  %v925_v23 = vpop.f32.mrb[7].mxu0 }
 0x571   :  { %v961_v24 = vpop.f32.mrb[4].mxu1 }
 0x572   :  { %v971_v25 = vsel %vm1655_vm6, %v961_v24, 0.0  ;;  %v963_v26 = vpop.f32.mrb[5].mxu1 }
 0x573   :  { %v972_v27 = vadd.f32 %v971_v25, %v970_v22  ;;  %v973_v28 = vsel %vm1656_vm15, %v963_v26, 0.0  ;;  %v965_v35 = vpop.f32.mrb[6].mxu1 }
 0x574   :  { %v966_v41 = vpop.f32.mrb[7].mxu1 }
 0x575   :  { %v974_v61 = vadd.f32 %v973_v28, %v972_v27 }
 0x577   :  { %975 = vadd.xlane.f32.xlu1 %v974_v61 }
 0x604   :  { %v976_v29 = vpop.xlane.xlu1 %975 }
 0x605   :  { %v977_v30 = vmul.f32 0.001953125, %v976_v29 }
 0x607   :  { %v978_v43 = vsub.f32 %v920_v59, %v977_v30  ;;  %v979_v31 = vsub.f32 %v922_v21, %v977_v30  ;;  %v980_v5 = vsub.f32 %v961_v24, %v977_v30  ;;  %v981_v10 = vsub.f32 %v963_v26, %v977_v30 }
 0x609   :  { %v982_v33 = vmul.f32 %v978_v43, %v978_v43  ;;  %v983_v34 = vmul.f32 %v979_v31, %v979_v31  ;;  %v984_v36 = vmul.f32 %v980_v5, %v980_v5  ;;  %v985_v6 = vmul.f32 %v981_v10, %v981_v10 }
 0x60b   :  { %v986_v37 = vsel %vm1657_vm1, %v982_v33, 0.0  ;;  %v987_v38 = vsel %vm1658_vm0, %v983_v34, 0.0  ;;  %v989_v32 = vsel %vm1659_vm13, %v984_v36, 0.0  ;;  %v991_v44 = vsel %vm1660_vm2, %v985_v6, 0.0 }
 0x60c   :  { %v988_v42 = vadd.f32 %v987_v38, %v986_v37 }
 0x60e   :  { %v990_v13 = vadd.f32 %v989_v32, %v988_v42 }
 0x610   :  { %v992_v47 = vadd.f32 %v991_v44, %v990_v13 }
 0x612   :  { %993 = vadd.xlane.f32.xlu0 %v992_v47 }
 0x628   :  { %1005 = vperm.xlu0 %1057, %v1002_v16  }
 0x69f   :  { %v994_v9 = vpop.xlane.xlu0 %993 }
 0x6a0   :  { %v995_v46 = vmul.f32 0.001953125, %v994_v9 }
 0x6a2   :  { %v996_v4 = vadd.f32 1e-05, %v995_v46 }
 0x6a4   :  { %1064 = vrsqrt.f32 %v996_v4 }
 0x6a7   :  { %v1006_v40 = vpop.permute.xlu0 %1005 }
 0x6ae   :  { %v1065_v12 = vpop.eup %1064 }
 0x6af   :  { %v998_v3 = vmul.f32 %v1065_v12, %v978_v43  ;;  %v999_v15 = vmul.f32 %v1065_v12, %v979_v31  ;;  %v1000_v50 = vmul.f32 %v1065_v12, %v980_v5  ;;  %v1001_v54 = vmul.f32 %v1065_v12, %v981_v10 }
 0x6b1   :  { %v1008_v57 = vadd.f32 %v1006_v40, %v998_v3  ;;  %v1009_v52 = vadd.f32 %v1006_v40, %v999_v15  ;;  %v1010_v60 = vadd.f32 %v1006_v40, %v1000_v50  ;;  %v1011_v55 = vadd.f32 %v1006_v40, %v1001_v54 }
 0x6b3   :  { %v1016_v62 = vadd.f32 %v1066_v63, %v1008_v57  ;;  %v1017_v0 = vadd.f32 %v1012_v48, %v1009_v52  ;;  %v1018_v39 = vadd.f32 %v1067_v45, %v1010_v60  ;;  %v1019_v1 = vadd.f32 %v1013_v49, %v1011_v55 }
 0x6b5   :  { %v1020_v2 = vmax.f32 %v1016_v62, 0.0  ;;  %v1021_v56 = vmax.f32 %v1017_v0, 0.0  ;;  %v1022_v58 = vmax.f32 %v1018_v39, 0.0  ;;  %v1023_v7 = vmax.f32 %v1019_v1, 0.0 }
 0x6b7   :  { %v1028_v8 = vcombine.low %v1020_v2, %v1021_v56  ;;  %v1029_v11 = vcombine.low %v1022_v58, %v1023_v7 }
 0x6b9   :  { %1032 = vst [vmem:[%s1543_s7] sm:$0xff] %v1028_v8  ;;  %1033 = vst [vmem:[%s1543_s7 + $0x8] sm:$0xff] %v1029_v11 }

</bundles_post_ra>
